<compile_context>
chip_gen: v6e
topology: v6e:2x2x1
jax: 0.10.0
libtpu: 0.0.40
codegen_flags: <defaults>
</compile_context>

<pallas_src>
import functools

import jax
import jax.numpy as jnp
from jax import lax
from jax.experimental import pallas as pl
from jax.experimental.pallas import tpu as pltpu


def _layernorm(x, gamma, beta, eps=1e-5):
    mu = jnp.mean(x, axis=-1, keepdims=True)
    var = jnp.mean((x - mu) ** 2, axis=-1, keepdims=True)
    return (x - mu) * lax.rsqrt(var + eps) * gamma + beta


def _attention_ffn_body(mask, q_ref, k_ref, v_ref,
                        wq_ref, wk_ref, wv_ref, wo_ref, bo_ref,
                        g1_ref, be1_ref, w1_ref, b1_ref, w2_ref, b2_ref,
                        g2_ref, be2_ref, out_ref,
                        *, nhead, d, emb, compute_dtype):
    cd = compute_dtype
    q = q_ref[0]                      # (tq, E) f32
    k = k_ref[0]                      # (Lk, E) f32
    v = v_ref[0]                      # (Lk, E) f32
    tq, E = q.shape
    Lk = k.shape[0]

    # (L, E) -> (L, h, d); shared per-head projection x @ W.T as one batched
    # contraction (replaces the block-diagonal (E, E) mostly-zero matmul).
    qh = q.reshape(tq, nhead, d).astype(cd)
    kh = k.reshape(Lk, nhead, d).astype(cd)
    vh = v.reshape(Lk, nhead, d).astype(cd)

    qp = jnp.einsum("qhd,ed->hqe", qh, wq_ref[...],
                    preferred_element_type=jnp.float32)       # (h, tq, d)
    kp = jnp.einsum("khd,ed->hke", kh, wk_ref[...],
                    preferred_element_type=jnp.float32)       # (h, Lk, d)
    vp = jnp.einsum("khd,ed->hke", vh, wv_ref[...],
                    preferred_element_type=jnp.float32)       # (h, Lk, d)

    # Hoist 1/sqrt(E) onto Q: O(L*E) multiplies instead of O(h*Lq*Lk).
    qp = qp * (1.0 / float(emb) ** 0.5)

    # One batched contraction over all heads (no per-head 8x8 matmuls/concat).
    energy = jnp.einsum("hqd,hkd->hqk", qp.astype(cd), kp.astype(cd),
                        preferred_element_type=jnp.float32)   # (h, tq, Lk)
    energy = jnp.where(mask[None, :, :], energy, jnp.float32(-1e20))

    m = jnp.max(energy, axis=-1, keepdims=True)
    p = jnp.exp(energy - m)
    denom = jnp.sum(p, axis=-1, keepdims=True)
    attn = p * pl.reciprocal(denom, approx=True)              # EUP, frees VALU

    ctx = jnp.einsum("hqk,hkd->qhd", attn.astype(cd), vp.astype(cd),
                     preferred_element_type=jnp.float32)      # (tq, h, d)
    att = ctx.reshape(tq, E)

    att = jnp.dot(att.astype(cd), wo_ref[...],
                  preferred_element_type=jnp.float32) + bo_ref[...]

    # Residual + LayerNorm 1 (dropout = identity in eval mode), all f32.
    x = _layernorm(att + q, g1_ref[...], be1_ref[...])

    # Feed-forward.
    h1 = jnp.dot(x.astype(cd), w1_ref[...],
                 preferred_element_type=jnp.float32) + b1_ref[...]
    h1 = jnp.maximum(h1, 0.0)
    ff = jnp.dot(h1.astype(cd), w2_ref[...],
                 preferred_element_type=jnp.float32) + b2_ref[...]

    # Residual + LayerNorm 2.
    out_ref[0] = _layernorm(ff + x, g2_ref[...], be2_ref[...]).astype(out_ref.dtype)


def _causal_kernel(q_ref, k_ref, v_ref,
                   wq_ref, wk_ref, wv_ref, wo_ref, bo_ref,
                   g1_ref, be1_ref, w1_ref, b1_ref, w2_ref, b2_ref,
                   g2_ref, be2_ref, out_ref,
                   *, nhead, d, emb, tq, compute_dtype):
    # Generate the causal mask in-kernel: no (N, Lq, Lk) mask DMA at all.
    Lk = k_ref.shape[1]
    q0 = pl.program_id(1) * tq
    row = q0 + lax.broadcasted_iota(jnp.int32, (tq, Lk), 0)
    col = lax.broadcasted_iota(jnp.int32, (tq, Lk), 1)
    mask = row >= col
    _attention_ffn_body(mask, q_ref, k_ref, v_ref,
                        wq_ref, wk_ref, wv_ref, wo_ref, bo_ref,
                        g1_ref, be1_ref, w1_ref, b1_ref, w2_ref, b2_ref,
                        g2_ref, be2_ref, out_ref,
                        nhead=nhead, d=d, emb=emb, compute_dtype=compute_dtype)


def _masked_kernel(mask_ref, q_ref, k_ref, v_ref,
                   wq_ref, wk_ref, wv_ref, wo_ref, bo_ref,
                   g1_ref, be1_ref, w1_ref, b1_ref, w2_ref, b2_ref,
                   g2_ref, be2_ref, out_ref,
                   *, nhead, d, emb, tq, compute_dtype):
    del tq
    mask = mask_ref[0] != 0           # int8 mask, 4x less DMA than f32
    _attention_ffn_body(mask, q_ref, k_ref, v_ref,
                        wq_ref, wk_ref, wv_ref, wo_ref, bo_ref,
                        g1_ref, be1_ref, w1_ref, b1_ref, w2_ref, b2_ref,
                        g2_ref, be2_ref, out_ref,
                        nhead=nhead, d=d, emb=emb, compute_dtype=compute_dtype)


def transformer_block(value, key, query, mask, params, *, nhead,
                      causal=False, compute_dtype=jnp.float32, q_tile=512):
    N, Lq, E = query.shape
    Lk = key.shape[1]
    d = E // nhead
    F_E = params["W1"].shape[0]

    tq = min(Lq, q_tile)              # large q tiles amortize per-step overhead
    n_q = pl.cdiv(Lq, tq)

    cd = compute_dtype
    # Per-head projection weights stay (d, d): no block-diagonal zero padding.
    wq = params["Wq"].astype(cd)
    wk = params["Wk"].astype(cd)
    wv = params["Wv"].astype(cd)
    wo_t = params["Wo"].T.astype(cd)
    w1_t = params["W1"].T.astype(cd)
    w2_t = params["W2"].T.astype(cd)
    bo = params["bo"].reshape(1, E).astype(jnp.float32)
    b1 = params["b1"].reshape(1, F_E).astype(jnp.float32)
    b2 = params["b2"].reshape(1, E).astype(jnp.float32)
    g1 = params["g1"].reshape(1, E).astype(jnp.float32)
    be1 = params["be1"].reshape(1, E).astype(jnp.float32)
    g2 = params["g2"].reshape(1, E).astype(jnp.float32)
    be2 = params["be2"].reshape(1, E).astype(jnp.float32)

    def rep(shape):
        # Constant-index block: Pallas only re-DMAs when the block index changes.
        return pl.BlockSpec(shape, lambda n, qi: tuple(0 for _ in shape))

    weights = (wq, wk, wv, wo_t, bo, g1, be1, w1_t, b1, w2_t, b2, g2, be2)
    weight_specs = [rep(w.shape) for w in weights]

    qkv_specs = [
        pl.BlockSpec((1, tq, E), lambda n, qi: (n, qi, 0)),   # query tile
        pl.BlockSpec((1, Lk, E), lambda n, qi: (n, 0, 0)),    # key (full)
        pl.BlockSpec((1, Lk, E), lambda n, qi: (n, 0, 0)),    # value (full)
    ]

    common = dict(nhead=nhead, d=d, emb=E, tq=tq, compute_dtype=cd)

    if causal:
        kernel = functools.partial(_causal_kernel, **common)
        in_specs = qkv_specs + weight_specs
        args = (query, key, value) + weights
    else:
        if mask is None:
            raise ValueError("mask must be provided when causal=False")
        kernel = functools.partial(_masked_kernel, **common)
        mask_i8 = (mask != 0).astype(jnp.int8)
        in_specs = ([pl.BlockSpec((1, tq, Lk), lambda n, qi: (n, qi, 0))]
                    + qkv_specs + weight_specs)
        args = (mask_i8, query, key, value) + weights

    return pl.pallas_call(
        kernel,
        out_shape=jax.ShapeDtypeStruct((N, Lq, E), jnp.float32),
        grid=(N, n_q),
        in_specs=in_specs,
        out_specs=pl.BlockSpec((1, tq, E), lambda n, qi: (n, qi, 0)),
        compiler_params=pltpu.CompilerParams(
            dimension_semantics=("parallel", "parallel"),
            vmem_limit_bytes=32 * 1024 * 1024,
        ),
    )(*args)


def reference(value, key, query, mask, p, *, nhead):
    """Pure-JAX replica of the PyTorch TransformerBlock.forward (eval mode)."""
    N, Lq, E = query.shape
    Lk = key.shape[1]
    d = E // nhead
    qr = query.reshape(N, Lq, nhead, d) @ p["Wq"].T
    kr = key.reshape(N, Lk, nhead, d) @ p["Wk"].T
    vr = value.reshape(N, Lk, nhead, d) @ p["Wv"].T
    energy = jnp.einsum("nqhd,nkhd->nhqk", qr, kr)
    energy = jnp.where(mask[:, None, :, :] == 0, -1e20, energy)
    attn = jax.nn.softmax(energy / (E ** 0.5), axis=3)
    out = jnp.einsum("nhqk,nkhd->nqhd", attn, vr).reshape(N, Lq, E)
    att = out @ p["Wo"].T + p["bo"]
    x = _layernorm(att + query, p["g1"], p["be1"])
    ff = jnp.maximum(x @ p["W1"].T + p["b1"], 0.0) @ p["W2"].T + p["b2"]
    return _layernorm(ff + x, p["g2"], p["be2"])


if __name__ == "__main__":
    N, L, E, nhead, F = 2, 8, 32, 4, 4
    d = E // nhead

    key0 = jax.random.PRNGKey(0)
    ks = jax.random.split(key0, 16)

    params = {
        "Wq": jax.random.normal(ks[0], (d, d), jnp.float32) * 0.1,
        "Wk": jax.random.normal(ks[1], (d, d), jnp.float32) * 0.1,
        "Wv": jax.random.normal(ks[2], (d, d), jnp.float32) * 0.1,
        "Wo": jax.random.normal(ks[3], (E, E), jnp.float32) * 0.1,
        "bo": jax.random.normal(ks[4], (E,), jnp.float32) * 0.1,
        "g1": jnp.ones((E,), jnp.float32),
        "be1": jnp.zeros((E,), jnp.float32),
        "W1": jax.random.normal(ks[5], (F * E, E), jnp.float32) * 0.1,
        "b1": jax.random.normal(ks[6], (F * E,), jnp.float32) * 0.1,
        "W2": jax.random.normal(ks[7], (E, F * E), jnp.float32) * 0.1,
        "b2": jax.random.normal(ks[8], (E,), jnp.float32) * 0.1,
        "g2": jnp.ones((E,), jnp.float32),
        "be2": jnp.zeros((E,), jnp.float32),
    }

    value = jax.random.normal(ks[9], (N, L, E), jnp.float32)
    key_t = jax.random.normal(ks[10], (N, L, E), jnp.float32)
    query = jax.random.normal(ks[11], (N, L, E), jnp.float32)
    mask = jnp.broadcast_to(jnp.tril(jnp.ones((L, L), jnp.float32)), (N, L, L))

    ref = reference(value, key_t, query, mask, params, nhead=nhead)

    # 1) Causal mask generated in-kernel (no mask DMA), f32 MXU compute.
    out_c = jax.block_until_ready(
        transformer_block(value, key_t, query, None, params,
                          nhead=nhead, causal=True))
    assert out_c.shape == (N, L, E)
    err_c = float(jnp.max(jnp.abs(out_c - ref)))
    assert err_c < 1e-2, f"causal f32 max abs err {err_c}"

    # 2) Explicit (int8) mask path for arbitrary masks.
    out_m = jax.block_until_ready(
        transformer_block(value, key_t, query, mask, params,
                          nhead=nhead, causal=False))
    err_m = float(jnp.max(jnp.abs(out_m - ref)))
    assert err_m < 1e-2, f"masked f32 max abs err {err_m}"

    # 3) bf16 MXU compute (v6e/v7x production setting), f32 accumulation.
    out_b = jax.block_until_ready(
        transformer_block(value, key_t, query, None, params,
                          nhead=nhead, causal=True, compute_dtype=jnp.bfloat16))
    err_b = float(jnp.max(jnp.abs(out_b - ref)))
    assert err_b < 1e-1, f"causal bf16 max abs err {err_b}"

    print("KERNEL_OK")
</pallas_src>

<mosaic_0001>
module attributes {stable_mosaic.version = 11 : i64} {
  func.func @_causal_kernel(%arg0: i32, %arg1: i32, %arg2: memref<1x8x32xf32, #tpu.memory_space<vmem>>, %arg3: memref<1x8x32xf32, #tpu.memory_space<vmem>>, %arg4: memref<1x8x32xf32, #tpu.memory_space<vmem>>, %arg5: memref<8x8xf32, #tpu.memory_space<vmem>>, %arg6: memref<8x8xf32, #tpu.memory_space<vmem>>, %arg7: memref<8x8xf32, #tpu.memory_space<vmem>>, %arg8: memref<32x32xf32, #tpu.memory_space<vmem>>, %arg9: memref<1x32xf32, #tpu.memory_space<vmem>>, %arg10: memref<1x32xf32, #tpu.memory_space<vmem>>, %arg11: memref<1x32xf32, #tpu.memory_space<vmem>>, %arg12: memref<32x128xf32, #tpu.memory_space<vmem>>, %arg13: memref<1x128xf32, #tpu.memory_space<vmem>>, %arg14: memref<128x32xf32, #tpu.memory_space<vmem>>, %arg15: memref<1x32xf32, #tpu.memory_space<vmem>>, %arg16: memref<1x32xf32, #tpu.memory_space<vmem>>, %arg17: memref<1x32xf32, #tpu.memory_space<vmem>>, %arg18: memref<1x8x32xf32, #tpu.memory_space<vmem>>) attributes {dimension_semantics = [#tpu.dimension_semantics<parallel>, #tpu.dimension_semantics<parallel>], iteration_bounds = array<i64: 2, 1>, scalar_prefetch = 0 : i64, scratch_operands = 0 : i64, tpu.core_type = #tpu.core_type<tc>, window_params = [{transform_indices = @transform_0, window_bounds = array<i64: 1, 8, 32>}, {transform_indices = @transform_1, window_bounds = array<i64: 1, 8, 32>}, {transform_indices = @transform_2, window_bounds = array<i64: 1, 8, 32>}, {pipeline_mode = #tpu.pipeline_mode<synchronous>, transform_indices = @transform_3, window_bounds = array<i64: 8, 8>}, {pipeline_mode = #tpu.pipeline_mode<synchronous>, transform_indices = @transform_4, window_bounds = array<i64: 8, 8>}, {pipeline_mode = #tpu.pipeline_mode<synchronous>, transform_indices = @transform_5, window_bounds = array<i64: 8, 8>}, {pipeline_mode = #tpu.pipeline_mode<synchronous>, transform_indices = @transform_6, window_bounds = array<i64: 32, 32>}, {pipeline_mode = #tpu.pipeline_mode<synchronous>, transform_indices = @transform_7, window_bounds = array<i64: 1, 32>}, {pipeline_mode = #tpu.pipeline_mode<synchronous>, transform_indices = @transform_8, window_bounds = array<i64: 1, 32>}, {pipeline_mode = #tpu.pipeline_mode<synchronous>, transform_indices = @transform_9, window_bounds = array<i64: 1, 32>}, {pipeline_mode = #tpu.pipeline_mode<synchronous>, transform_indices = @transform_10, window_bounds = array<i64: 32, 128>}, {pipeline_mode = #tpu.pipeline_mode<synchronous>, transform_indices = @transform_11, window_bounds = array<i64: 1, 128>}, {pipeline_mode = #tpu.pipeline_mode<synchronous>, transform_indices = @transform_12, window_bounds = array<i64: 128, 32>}, {pipeline_mode = #tpu.pipeline_mode<synchronous>, transform_indices = @transform_13, window_bounds = array<i64: 1, 32>}, {pipeline_mode = #tpu.pipeline_mode<synchronous>, transform_indices = @transform_14, window_bounds = array<i64: 1, 32>}, {pipeline_mode = #tpu.pipeline_mode<synchronous>, transform_indices = @transform_15, window_bounds = array<i64: 1, 32>}, {transform_indices = @transform_16, window_bounds = array<i64: 1, 8, 32>}]} {
    %c8_i32 = arith.constant 8 : i32
    %0 = arith.muli %arg1, %c8_i32 : i32
    %1 = tpu.iota {dimensions = array<i32: 0>} : vector<8x8xi32>
    %2 = vector.broadcast %0 : i32 to vector<8x8xi32>
    %3 = arith.addi %2, %1 : vector<8x8xi32>
    %4 = tpu.iota {dimensions = array<i32: 1>} : vector<8x8xi32>
    %5 = arith.cmpi sge, %3, %4 : vector<8x8xi32>
    %c0 = arith.constant 0 : index
    %c0_0 = arith.constant 0 : index
    %c0_1 = arith.constant 0 : index
    %6 = vector.load %arg2[%c0, %c0_0, %c0_1] : memref<1x8x32xf32, #tpu.memory_space<vmem>>, vector<1x8x32xf32>
    %7 = vector.shape_cast %6 : vector<1x8x32xf32> to vector<8x32xf32>
    %c0_2 = arith.constant 0 : index
    %c0_3 = arith.constant 0 : index
    %c0_4 = arith.constant 0 : index
    %8 = vector.load %arg3[%c0_2, %c0_3, %c0_4] : memref<1x8x32xf32, #tpu.memory_space<vmem>>, vector<1x8x32xf32>
    %9 = vector.shape_cast %8 : vector<1x8x32xf32> to vector<8x32xf32>
    %c0_5 = arith.constant 0 : index
    %c0_6 = arith.constant 0 : index
    %c0_7 = arith.constant 0 : index
    %10 = vector.load %arg4[%c0_5, %c0_6, %c0_7] : memref<1x8x32xf32, #tpu.memory_space<vmem>>, vector<1x8x32xf32>
    %11 = vector.shape_cast %10 : vector<1x8x32xf32> to vector<8x32xf32>
    %12 = vector.shape_cast %7 : vector<8x32xf32> to vector<8x4x8xf32>
    %13 = vector.shape_cast %9 : vector<8x32xf32> to vector<8x4x8xf32>
    %14 = vector.shape_cast %11 : vector<8x32xf32> to vector<8x4x8xf32>
    %c0_8 = arith.constant 0 : index
    %c0_9 = arith.constant 0 : index
    %15 = vector.load %arg5[%c0_8, %c0_9] : memref<8x8xf32, #tpu.memory_space<vmem>>, vector<8x8xf32>
    "tpu.trace_start"() <{level = 10 : i32, message = "qhd,ed->hqe"}> : () -> ()
    %cst = arith.constant dense<0.000000e+00> : vector<8x8x4xf32>
    %16 = tpu.matmul %15, %12, %cst {dimension_numbers = #tpu.dot_dimension_numbers<[1], [2], [0], [0, 1], [0, 0, 1, 0, 1, 1], [], []>} : vector<8x8xf32>, vector<8x4x8xf32>, vector<8x8x4xf32> -> vector<8x8x4xf32>
    %17 = tpu.transpose %16, [2, 1, 0] : vector<8x8x4xf32> -> vector<4x8x8xf32>
    "tpu.trace_stop"() : () -> ()
    %c0_10 = arith.constant 0 : index
    %c0_11 = arith.constant 0 : index
    %18 = vector.load %arg6[%c0_10, %c0_11] : memref<8x8xf32, #tpu.memory_space<vmem>>, vector<8x8xf32>
    "tpu.trace_start"() <{level = 10 : i32, message = "khd,ed->hke"}> : () -> ()
    %cst_12 = arith.constant dense<0.000000e+00> : vector<8x8x4xf32>
    %19 = tpu.matmul %18, %13, %cst_12 {dimension_numbers = #tpu.dot_dimension_numbers<[1], [2], [0], [0, 1], [0, 0, 1, 0, 1, 1], [], []>} : vector<8x8xf32>, vector<8x4x8xf32>, vector<8x8x4xf32> -> vector<8x8x4xf32>
    %20 = tpu.transpose %19, [2, 1, 0] : vector<8x8x4xf32> -> vector<4x8x8xf32>
    "tpu.trace_stop"() : () -> ()
    %c0_13 = arith.constant 0 : index
    %c0_14 = arith.constant 0 : index
    %21 = vector.load %arg7[%c0_13, %c0_14] : memref<8x8xf32, #tpu.memory_space<vmem>>, vector<8x8xf32>
    "tpu.trace_start"() <{level = 10 : i32, message = "khd,ed->hke"}> : () -> ()
    %cst_15 = arith.constant dense<0.000000e+00> : vector<8x8x4xf32>
    %22 = tpu.matmul %21, %14, %cst_15 {dimension_numbers = #tpu.dot_dimension_numbers<[1], [2], [0], [0, 1], [0, 0, 1, 0, 1, 1], [], []>} : vector<8x8xf32>, vector<8x4x8xf32>, vector<8x8x4xf32> -> vector<8x8x4xf32>
    %23 = tpu.transpose %22, [2, 1, 0] : vector<8x8x4xf32> -> vector<4x8x8xf32>
    "tpu.trace_stop"() : () -> ()
    %cst_16 = arith.constant 0.176776692 : f32
    %24 = vector.broadcast %cst_16 : f32 to vector<4x8x8xf32>
    %25 = arith.mulf %17, %24 : vector<4x8x8xf32>
    "tpu.trace_start"() <{level = 10 : i32, message = "hqd,hkd->hqk"}> : () -> ()
    %cst_17 = arith.constant dense<0.000000e+00> : vector<4x8x8xf32>
    %26 = tpu.matmul %25, %20, %cst_17 {dimension_numbers = #tpu.dot_dimension_numbers<[2], [2], [1], [1], [0, 0, 0, 1, 1, 1], [0], [0]>} : vector<4x8x8xf32>, vector<4x8x8xf32>, vector<4x8x8xf32> -> vector<4x8x8xf32>
    "tpu.trace_stop"() : () -> ()
    %27 = vector.shape_cast %5 : vector<8x8xi1> to vector<1x8x8xi1>
    %cst_18 = arith.constant -1.000000e+20 : f32
    %28 = vector.shape_cast %27 : vector<1x8x8xi1> to vector<1x8x8xi1>
    %29 = vector.broadcast %28 : vector<1x8x8xi1> to vector<4x8x8xi1>
    %30 = vector.broadcast %cst_18 : f32 to vector<4x8x8xf32>
    %31 = arith.select %29, %26, %30 : vector<4x8x8xi1>, vector<4x8x8xf32>
    %cst_19 = arith.constant dense<0xFF800000> : vector<4x8xf32>
    %32 = vector.multi_reduction <maximumf>, %31, %cst_19 [2] : vector<4x8x8xf32> to vector<4x8xf32>
    %33 = vector.shape_cast %32 : vector<4x8xf32> to vector<4x8x1xf32>
    %34 = vector.broadcast %33 : vector<4x8x1xf32> to vector<4x8x8xf32>
    %35 = arith.subf %31, %34 : vector<4x8x8xf32>
    %36 = math.exp %35 : vector<4x8x8xf32>
    %cst_20 = arith.constant dense<0.000000e+00> : vector<4x8xf32>
    %37 = vector.multi_reduction <add>, %36, %cst_20 [2] : vector<4x8x8xf32> to vector<4x8xf32>
    %38 = vector.shape_cast %37 : vector<4x8xf32> to vector<4x8x1xf32>
    %39 = tpu.reciprocal %38 {approx = true} : vector<4x8x1xf32> -> vector<4x8x1xf32>
    %40 = vector.broadcast %39 : vector<4x8x1xf32> to vector<4x8x8xf32>
    %41 = arith.mulf %36, %40 : vector<4x8x8xf32>
    "tpu.trace_start"() <{level = 10 : i32, message = "hqk,hkd->qhd"}> : () -> ()
    %cst_21 = arith.constant dense<0.000000e+00> : vector<4x8x8xf32>
    %42 = tpu.matmul %23, %41, %cst_21 {dimension_numbers = #tpu.dot_dimension_numbers<[1], [2], [2], [1], [0, 0, 0, 2, 1, 1], [0], [0]>} : vector<4x8x8xf32>, vector<4x8x8xf32>, vector<4x8x8xf32> -> vector<4x8x8xf32>
    %43 = tpu.transpose %42, [2, 0, 1] : vector<4x8x8xf32> -> vector<8x4x8xf32>
    "tpu.trace_stop"() : () -> ()
    %44 = vector.shape_cast %43 : vector<8x4x8xf32> to vector<8x32xf32>
    %c0_22 = arith.constant 0 : index
    %c0_23 = arith.constant 0 : index
    %45 = vector.load %arg8[%c0_22, %c0_23] : memref<32x32xf32, #tpu.memory_space<vmem>>, vector<32x32xf32>
    %cst_24 = arith.constant dense<0.000000e+00> : vector<8x32xf32>
    %46 = tpu.matmul %44, %45, %cst_24 {dimension_numbers = #tpu.dot_dimension_numbers<[1], [0], [0], [1], [0, 0, 1, 1], [], []>} : vector<8x32xf32>, vector<32x32xf32>, vector<8x32xf32> -> vector<8x32xf32>
    %c0_25 = arith.constant 0 : index
    %c0_26 = arith.constant 0 : index
    %47 = vector.load %arg9[%c0_25, %c0_26] : memref<1x32xf32, #tpu.memory_space<vmem>>, vector<1x32xf32>
    %48 = vector.broadcast %47 : vector<1x32xf32> to vector<8x32xf32>
    %49 = arith.addf %46, %48 : vector<8x32xf32>
    %50 = arith.addf %49, %7 : vector<8x32xf32>
    %c0_27 = arith.constant 0 : index
    %c0_28 = arith.constant 0 : index
    %51 = vector.load %arg10[%c0_27, %c0_28] : memref<1x32xf32, #tpu.memory_space<vmem>>, vector<1x32xf32>
    %c0_29 = arith.constant 0 : index
    %c0_30 = arith.constant 0 : index
    %52 = vector.load %arg11[%c0_29, %c0_30] : memref<1x32xf32, #tpu.memory_space<vmem>>, vector<1x32xf32>
    %cst_31 = arith.constant dense<0.000000e+00> : vector<8xf32>
    %53 = vector.multi_reduction <add>, %50, %cst_31 [1] : vector<8x32xf32> to vector<8xf32>
    %54 = vector.shape_cast %53 : vector<8xf32> to vector<8x1xf32>
    %cst_32 = arith.constant 3.200000e+01 : f32
    %55 = vector.broadcast %cst_32 : f32 to vector<8x1xf32>
    %56 = arith.divf %54, %55 : vector<8x1xf32>
    %57 = vector.broadcast %56 : vector<8x1xf32> to vector<8x32xf32>
    %58 = arith.subf %50, %57 : vector<8x32xf32>
    %59 = arith.mulf %58, %58 : vector<8x32xf32>
    %cst_33 = arith.constant dense<0.000000e+00> : vector<8xf32>
    %60 = vector.multi_reduction <add>, %59, %cst_33 [1] : vector<8x32xf32> to vector<8xf32>
    %61 = vector.shape_cast %60 : vector<8xf32> to vector<8x1xf32>
    %cst_34 = arith.constant 3.200000e+01 : f32
    %62 = vector.broadcast %cst_34 : f32 to vector<8x1xf32>
    %63 = arith.divf %61, %62 : vector<8x1xf32>
    %64 = vector.broadcast %56 : vector<8x1xf32> to vector<8x32xf32>
    %65 = arith.subf %50, %64 : vector<8x32xf32>
    %cst_35 = arith.constant 9.99999974E-6 : f32
    %66 = vector.broadcast %cst_35 : f32 to vector<8x1xf32>
    %67 = arith.addf %63, %66 : vector<8x1xf32>
    %68 = math.rsqrt %67 : vector<8x1xf32>
    %69 = vector.broadcast %68 : vector<8x1xf32> to vector<8x32xf32>
    %70 = arith.mulf %65, %69 : vector<8x32xf32>
    %71 = vector.broadcast %51 : vector<1x32xf32> to vector<8x32xf32>
    %72 = arith.mulf %70, %71 : vector<8x32xf32>
    %73 = vector.broadcast %52 : vector<1x32xf32> to vector<8x32xf32>
    %74 = arith.addf %72, %73 : vector<8x32xf32>
    %c0_36 = arith.constant 0 : index
    %c0_37 = arith.constant 0 : index
    %75 = vector.load %arg12[%c0_36, %c0_37] : memref<32x128xf32, #tpu.memory_space<vmem>>, vector<32x128xf32>
    %cst_38 = arith.constant dense<0.000000e+00> : vector<8x128xf32>
    %76 = tpu.matmul %74, %75, %cst_38 {dimension_numbers = #tpu.dot_dimension_numbers<[1], [0], [0], [1], [0, 0, 1, 1], [], []>} : vector<8x32xf32>, vector<32x128xf32>, vector<8x128xf32> -> vector<8x128xf32>
    %c0_39 = arith.constant 0 : index
    %c0_40 = arith.constant 0 : index
    %77 = vector.load %arg13[%c0_39, %c0_40] : memref<1x128xf32, #tpu.memory_space<vmem>>, vector<1x128xf32>
    %78 = vector.broadcast %77 : vector<1x128xf32> to vector<8x128xf32>
    %79 = arith.addf %76, %78 : vector<8x128xf32>
    %cst_41 = arith.constant 0.000000e+00 : f32
    %80 = vector.broadcast %cst_41 : f32 to vector<8x128xf32>
    %81 = arith.maximumf %79, %80 : vector<8x128xf32>
    %c0_42 = arith.constant 0 : index
    %c0_43 = arith.constant 0 : index
    %82 = vector.load %arg14[%c0_42, %c0_43] : memref<128x32xf32, #tpu.memory_space<vmem>>, vector<128x32xf32>
    %cst_44 = arith.constant dense<0.000000e+00> : vector<8x32xf32>
    %83 = tpu.matmul %81, %82, %cst_44 {dimension_numbers = #tpu.dot_dimension_numbers<[1], [0], [0], [1], [0, 0, 1, 1], [], []>} : vector<8x128xf32>, vector<128x32xf32>, vector<8x32xf32> -> vector<8x32xf32>
    %c0_45 = arith.constant 0 : index
    %c0_46 = arith.constant 0 : index
    %84 = vector.load %arg15[%c0_45, %c0_46] : memref<1x32xf32, #tpu.memory_space<vmem>>, vector<1x32xf32>
    %85 = vector.broadcast %84 : vector<1x32xf32> to vector<8x32xf32>
    %86 = arith.addf %83, %85 : vector<8x32xf32>
    %87 = arith.addf %86, %74 : vector<8x32xf32>
    %c0_47 = arith.constant 0 : index
    %c0_48 = arith.constant 0 : index
    %88 = vector.load %arg16[%c0_47, %c0_48] : memref<1x32xf32, #tpu.memory_space<vmem>>, vector<1x32xf32>
    %c0_49 = arith.constant 0 : index
    %c0_50 = arith.constant 0 : index
    %89 = vector.load %arg17[%c0_49, %c0_50] : memref<1x32xf32, #tpu.memory_space<vmem>>, vector<1x32xf32>
    %cst_51 = arith.constant dense<0.000000e+00> : vector<8xf32>
    %90 = vector.multi_reduction <add>, %87, %cst_51 [1] : vector<8x32xf32> to vector<8xf32>
    %91 = vector.shape_cast %90 : vector<8xf32> to vector<8x1xf32>
    %cst_52 = arith.constant 3.200000e+01 : f32
    %92 = vector.broadcast %cst_52 : f32 to vector<8x1xf32>
    %93 = arith.divf %91, %92 : vector<8x1xf32>
    %94 = vector.broadcast %93 : vector<8x1xf32> to vector<8x32xf32>
    %95 = arith.subf %87, %94 : vector<8x32xf32>
    %96 = arith.mulf %95, %95 : vector<8x32xf32>
    %cst_53 = arith.constant dense<0.000000e+00> : vector<8xf32>
    %97 = vector.multi_reduction <add>, %96, %cst_53 [1] : vector<8x32xf32> to vector<8xf32>
    %98 = vector.shape_cast %97 : vector<8xf32> to vector<8x1xf32>
    %cst_54 = arith.constant 3.200000e+01 : f32
    %99 = vector.broadcast %cst_54 : f32 to vector<8x1xf32>
    %100 = arith.divf %98, %99 : vector<8x1xf32>
    %101 = vector.broadcast %93 : vector<8x1xf32> to vector<8x32xf32>
    %102 = arith.subf %87, %101 : vector<8x32xf32>
    %cst_55 = arith.constant 9.99999974E-6 : f32
    %103 = vector.broadcast %cst_55 : f32 to vector<8x1xf32>
    %104 = arith.addf %100, %103 : vector<8x1xf32>
    %105 = math.rsqrt %104 : vector<8x1xf32>
    %106 = vector.broadcast %105 : vector<8x1xf32> to vector<8x32xf32>
    %107 = arith.mulf %102, %106 : vector<8x32xf32>
    %108 = vector.broadcast %88 : vector<1x32xf32> to vector<8x32xf32>
    %109 = arith.mulf %107, %108 : vector<8x32xf32>
    %110 = vector.broadcast %89 : vector<1x32xf32> to vector<8x32xf32>
    %111 = arith.addf %109, %110 : vector<8x32xf32>
    %c0_56 = arith.constant 0 : index
    %c0_57 = arith.constant 0 : index
    %c0_58 = arith.constant 0 : index
    %112 = vector.load %arg18[%c0_56, %c0_57, %c0_58] : memref<1x8x32xf32, #tpu.memory_space<vmem>>, vector<1x8x32xf32>
    %113 = vector.shape_cast %112 : vector<1x8x32xf32> to vector<8x32xf32>
    %114 = vector.shape_cast %111 : vector<8x32xf32> to vector<1x8x32xf32>
    tpu.vector_store %arg18[%c0_56, %c0_57, %c0_58], %114 {strides = array<i32>} : memref<1x8x32xf32, #tpu.memory_space<vmem>>, vector<1x8x32xf32>,
    return
  }
  func.func @transform_0(%arg0: i32, %arg1: i32) -> (i32, i32, i32) {
    %c0_i32 = arith.constant 0 : i32
    %c0_i32_0 = arith.constant 0 : i32
    return %arg0, %arg1, %c0_i32 : i32, i32, i32
  }
  func.func @transform_1(%arg0: i32, %arg1: i32) -> (i32, i32, i32) {
    %c0_i32 = arith.constant 0 : i32
    %c0_i32_0 = arith.constant 0 : i32
    %c0_i32_1 = arith.constant 0 : i32
    return %arg0, %c0_i32, %c0_i32_0 : i32, i32, i32
  }
  func.func @transform_2(%arg0: i32, %arg1: i32) -> (i32, i32, i32) {
    %c0_i32 = arith.constant 0 : i32
    %c0_i32_0 = arith.constant 0 : i32
    %c0_i32_1 = arith.constant 0 : i32
    return %arg0, %c0_i32, %c0_i32_0 : i32, i32, i32
  }
  func.func @transform_3(%arg0: i32, %arg1: i32) -> (i32, i32) {
    %c0_i32 = arith.constant 0 : i32
    %c0_i32_0 = arith.constant 0 : i32
    %c0_i32_1 = arith.constant 0 : i32
    return %c0_i32, %c0_i32_0 : i32, i32
  }
  func.func @transform_4(%arg0: i32, %arg1: i32) -> (i32, i32) {
    %c0_i32 = arith.constant 0 : i32
    %c0_i32_0 = arith.constant 0 : i32
    %c0_i32_1 = arith.constant 0 : i32
    return %c0_i32, %c0_i32_0 : i32, i32
  }
  func.func @transform_5(%arg0: i32, %arg1: i32) -> (i32, i32) {
    %c0_i32 = arith.constant 0 : i32
    %c0_i32_0 = arith.constant 0 : i32
    %c0_i32_1 = arith.constant 0 : i32
    return %c0_i32, %c0_i32_0 : i32, i32
  }
  func.func @transform_6(%arg0: i32, %arg1: i32) -> (i32, i32) {
    %c0_i32 = arith.constant 0 : i32
    %c0_i32_0 = arith.constant 0 : i32
    %c0_i32_1 = arith.constant 0 : i32
    return %c0_i32, %c0_i32_0 : i32, i32
  }
  func.func @transform_7(%arg0: i32, %arg1: i32) -> (i32, i32) {
    %c0_i32 = arith.constant 0 : i32
    %c0_i32_0 = arith.constant 0 : i32
    %c0_i32_1 = arith.constant 0 : i32
    return %c0_i32, %c0_i32_0 : i32, i32
  }
  func.func @transform_8(%arg0: i32, %arg1: i32) -> (i32, i32) {
    %c0_i32 = arith.constant 0 : i32
    %c0_i32_0 = arith.constant 0 : i32
    %c0_i32_1 = arith.constant 0 : i32
    return %c0_i32, %c0_i32_0 : i32, i32
  }
  func.func @transform_9(%arg0: i32, %arg1: i32) -> (i32, i32) {
    %c0_i32 = arith.constant 0 : i32
    %c0_i32_0 = arith.constant 0 : i32
    %c0_i32_1 = arith.constant 0 : i32
    return %c0_i32, %c0_i32_0 : i32, i32
  }
  func.func @transform_10(%arg0: i32, %arg1: i32) -> (i32, i32) {
    %c0_i32 = arith.constant 0 : i32
    %c0_i32_0 = arith.constant 0 : i32
    %c0_i32_1 = arith.constant 0 : i32
    return %c0_i32, %c0_i32_0 : i32, i32
  }
  func.func @transform_11(%arg0: i32, %arg1: i32) -> (i32, i32) {
    %c0_i32 = arith.constant 0 : i32
    %c0_i32_0 = arith.constant 0 : i32
    %c0_i32_1 = arith.constant 0 : i32
    return %c0_i32, %c0_i32_0 : i32, i32
  }
  func.func @transform_12(%arg0: i32, %arg1: i32) -> (i32, i32) {
    %c0_i32 = arith.constant 0 : i32
    %c0_i32_0 = arith.constant 0 : i32
    %c0_i32_1 = arith.constant 0 : i32
    return %c0_i32, %c0_i32_0 : i32, i32
  }
  func.func @transform_13(%arg0: i32, %arg1: i32) -> (i32, i32) {
    %c0_i32 = arith.constant 0 : i32
    %c0_i32_0 = arith.constant 0 : i32
    %c0_i32_1 = arith.constant 0 : i32
    return %c0_i32, %c0_i32_0 : i32, i32
  }
  func.func @transform_14(%arg0: i32, %arg1: i32) -> (i32, i32) {
    %c0_i32 = arith.constant 0 : i32
    %c0_i32_0 = arith.constant 0 : i32
    %c0_i32_1 = arith.constant 0 : i32
    return %c0_i32, %c0_i32_0 : i32, i32
  }
  func.func @transform_15(%arg0: i32, %arg1: i32) -> (i32, i32) {
    %c0_i32 = arith.constant 0 : i32
    %c0_i32_0 = arith.constant 0 : i32
    %c0_i32_1 = arith.constant 0 : i32
    return %c0_i32, %c0_i32_0 : i32, i32
  }
  func.func @transform_16(%arg0: i32, %arg1: i32) -> (i32, i32, i32) {
    %c0_i32 = arith.constant 0 : i32
    %c0_i32_0 = arith.constant 0 : i32
    return %arg0, %arg1, %c0_i32 : i32, i32, i32
  }
}

</mosaic_0001>

<bundles_post_ra>
// kernel: tpu_custom_call.1
= control target key start
LH: loop header
LB: loop body
LE: loop exit
PB: predicated region body
PF: predicated region fallthrough
CT: control target
= control target key end

     0   :  { %s5500_s0 = inlined_call_operand.vmem [shape: f32[2,8,32], index: 0, kind: input, shape index: {}]   ;;  %s5501_s1 = inlined_call_operand.vmem [shape: f32[2,8,32], index: 1, kind: input, shape index: {}]   ;;  %s5502_s2 = inlined_call_operand.vmem [shape: f32[2,8,32], index: 2, kind: input, shape index: {}]   ;;  %s5503_s3 = inlined_call_operand.vmem [shape: f32[8,8], index: 3, kind: input, shape index: {}]   ;;  %s5504_s4 = inlined_call_operand.vmem [shape: f32[8,8], index: 4, kind: input, shape index: {}]   ;;  %s5505_s5 = inlined_call_operand.vmem [shape: f32[8,8], index: 5, kind: input, shape index: {}]   ;;  %s5506_s6 = inlined_call_operand.vmem [shape: f32[32,32], index: 6, kind: input, shape index: {}]   ;;  %s5507_s7 = inlined_call_operand.vmem [shape: f32[1,32], index: 7, kind: input, shape index: {}]   ;;  %s5508_s8 = inlined_call_operand.vmem [shape: f32[1,32], index: 8, kind: input, shape index: {}]   ;;  %s5509_s9 = inlined_call_operand.vmem [shape: f32[1,32], index: 9, kind: input, shape index: {}]   ;;  %s5510_s10 = inlined_call_operand.vmem [shape: f32[32,128], index: 10, kind: input, shape index: {}]   ;;  %s5511_s11 = inlined_call_operand.vmem [shape: f32[1,128], index: 11, kind: input, shape index: {}]   ;;  %s5512_s12 = inlined_call_operand.vmem [shape: f32[128,32], index: 12, kind: input, shape index: {}]   ;;  %s5513_s13 = inlined_call_operand.vmem [shape: f32[1,32], index: 13, kind: input, shape index: {}]   ;;  %s5514_s14 = inlined_call_operand.vmem [shape: f32[1,32], index: 14, kind: input, shape index: {}]   ;;  %s5515_s15 = inlined_call_operand.vmem [shape: f32[1,32], index: 15, kind: input, shape index: {}]   ;;  %s5516_s16 = inlined_call_operand.hbm [shape: f32[2,8,32], index: 16, kind: output, shape index: {}]  }
   0x1   :  { %5530 = sst [smem:[#allocation9_spill]] %s5500_s0 }
   0x2   :  { %5531 = sst [smem:[#allocation10_spill]] %s5501_s1 }
   0x3   :  { %5532 = sst [smem:[#allocation11_spill]] %s5502_s2 }
   0x4   :  { %5533 = sst [smem:[#allocation12_spill]] %s5503_s3 }
   0x5   :  { %5534 = sst [smem:[#allocation13_spill]] %s5504_s4 }
   0x6   :  { %21 = vsyncpa [#allocation3], 0 }
   0x7   :  { %23 = vsyncpa [#allocation3 + $0x1], 0  ;;  %s4910_s21 = smov 0   ;;  %s4912_s22 = smov 0  }
   0x8   :  { %s4914_s23 = smov 0   ;;  %s4916_s24 = smov 0  }
   0x9   :  { %s4918_s25 = smov 0   ;;  %s4920_s26 = smov 0  }
   0xa LB: > { %5535 = sst [smem:[#allocation5_spill]] %s4784_s21  ;;  %s4395_s27 = sadd.s32 4294967295, %s4804_s26   ;;  %s4804_s26 = sphi %s4920_s26, %s29_s26   ;;  %s4800_s25 = sphi %s4918_s25, %s5555_s25   ;;  %s4796_s24 = sphi %s4916_s24, %s5554_s24   ;;  %s4792_s23 = sphi %s4914_s23, %s5558_s23   ;;  %s4788_s22 = sphi %s4912_s22, %s5557_s22   ;;  %s4784_s21 = sphi %s4910_s21, %s5556_s21  }
   0xb   : > { %5536 = sst [smem:[#allocation6_spill]] %s4800_s25  ;;  %s4396_s28 = sadd.s32 4294967294, %s4804_s26  }
   0xc   : > { %s41_s29 = sadd.s32 1, %s4800_s25  ;;  %s403_s30 = sadd.s32 1, %s4792_s23 }
   0xd   : > { %p43_p0 = scmp.ge.s32.totalorder %s41_s29, 2  ;;  %p413_p1 = scmp.ne.s32.totalorder %s4792_s23, %s4788_s22 }
   0xe   : > { %p414_p2 = scmp.eq.s32.totalorder %s4395_s27, 1  ;;  %p419_p3 = scmp.ne.s32.totalorder %s4788_s22, %s4784_s21 }
   0xf   : > { %s5560_s29 = smov (%p43_p0, %s41_s29), 0  ;;  %p420_p5 = scmp.eq.s32.totalorder %s4396_s28, 1 }
  0x10   : > { %5537 = sst [smem:[#allocation7_spill]] %s5560_s29  ;;  %p4950_p4 = por %p414_p2, %p413_p1 }
  0x11   : > { %s398_s17 = ssub.s32 %s4800_s25, %s5560_s29  ;;  %p4399_p6 = scmp.ge.s32.totalorder %s4804_s26, 1 }
  0x12   : > { %p401_p7 = scmp.eq.s32.totalorder %s398_s17, 0  ;;  %p4957_p8 = por %p420_p5, %p419_p3 }
  0x13   : > { %p501_p9 = scmp.lt.s32.totalorder %s4804_s26, 3 }
  0x14   : > { %s5539_s18 = scalar_select %p4957_p8, 1, 0 }
  0x15   : > { %s4963_s19 = scalar_select %p401_p7, %s4792_s23, %s403_s30  }
  0x16   : > { %5540 = sst [smem:[#allocation8_spill]] %s5539_s18  ;;  %p502_p10 = pnand %p4399_p6, %p501_p9 }
  0x17   : > { %p561_p11 = scmp.lt.s32.totalorder (!%p502_p10), %s4796_s24, 1  ;;  %s5541_s25 = sld [smem:[#allocation9_spill]] (!%p502_p10) }
  0x18   : > { %505 = sbr.rel (%p502_p10) target bundleno = 3328 (0xd00), region = 84  ;;  %s5542_s1 = sld [smem:[#allocation10_spill]] (!%p502_p10) }
  0x19   : > { %s5525_s29 = smov (!%p502_p10), 120   ;;  %s5523_s21 = smov (!%p502_p10), 112  }
  0x1a   : > { %s5527_s18 = smov (!%p502_p10), 8   ;;  %s4815_s28 = smov (!%p502_p10), 12  }
  0x1b   : > { %s5543_s2 = sld [smem:[#allocation11_spill]] (!%p502_p10) }
  0x1c   : > { %s5545_s3 = sld [smem:[#allocation12_spill]] (!%p502_p10) }
  0x1d   : > { %s562_s20 = scalar_select %p561_p11, %s4796_s24, 1  ;;  %v4806_v0 = vmov 0.0   ;;  %vm4810_vm0 = vmmov 0   ;;  %v577_v3 = vlaneseq  ;;  %v4811_v4 = vmov 1983009808  }
  0x1e   : > { %4504 = vmatprep.subr.mxu1 %v4806_v0  ;;  %4526 = vmatprep.subr.mxu0 %v4806_v0  ;;  %v600_v5 = vunpack.c.l.s4 %v4811_v4  ;;  %v4812_v8 = vmov 1934713408   ;;  %v822_v12 = vcombine.low %v4806_v0, %v4806_v0  ;;  %v823_v13 = vcombine.high %v4806_v0, %v4806_v0  ;;  %s5546_s4 = sld [smem:[#allocation13_spill]] }
  0x1f   : > { %s4967_s27 = sshll.u32 %s562_s20, 3  ;;  %s5521_s20 = smov 104   ;;  %4512 = vmatprep.mubr.msk.f32.mxu1 %vm4810_vm0, %v4806_v0  ;;  %4534 = vmatprep.mubr.msk.f32.mxu0 %vm4810_vm0, %v4806_v0  ;;  %v5003_v6 = vshrl.u32 %v577_v3, 7  ;;  %v632_v9 = vunpack.c.l.s4 %v4812_v8  ;;  %vm908_vm1 = vcmask 64512   ;;  %vm906_vm2 = vcmask 31744  }
  0x20   : > { %s4973_s17 = scalar_lea.vmem %s5541_s25, %s4967_s27  ;;  %s571_s30 = scalar_lea.vmem %s5542_s1, %s4967_s27  ;;  %v601_v7 = vunpack.c.0.s8 %v600_v5  ;;  %vm910_vm3 = vcmask 97280   ;;  %vm912_vm4 = vcmask 130048   ;;  %vm914_vm5 = vcmask 162816  }
  0x21   : > { %v4982_v1 = vld [vmem:[%s4973_s17] sm:$0xff]  ;;  %v633_v11 = vunpack.c.0.s8 %v632_v9  ;;  %s4813_s25 = smov 4   ;;  %s4817_s1 = smov 20   ;;  %vm916_vm6 = vcmask 195584   ;;  %vm918_vm7 = vcmask 228352   ;;  %vm3971_vm9 = vcmask 261120  }
  0x22   : > { %594 = vrot.lane.b32.xlu1 %v4982_v1, %s5521_s20  ;;  %588 = vrot.lane.b32.xlu0 %v4982_v1, %s5525_s29  ;;  %v4988_v2 = vld [vmem:[%s571_s30] sm:$0xff]  ;;  %v5006_v10 = vsub.s32 %v601_v7, %v5003_v6  ;;  %s5529_s30 = smov 16  }
  0x23   : > { %v5015_v16 = vsub.s32 %v633_v11, %v5003_v6 }
  0x24   : > { %v830_v14 = vrot.slane %v822_v12, %v5006_v10  ;;  %v837_v15 = vrot.slane %v823_v13, %v5006_v10 }
  0x26   : > { %591 = vrot.lane.b32.xlu0 %v4982_v1, %s5523_s21  ;;  %666 = vrot.lane.b32.xlu1 %v4988_v2, %s5525_s29  ;;  %v838_v17 = vcombine.low %v830_v14, %v830_v14  ;;  %v839_v18 = vcombine.high %v830_v14, %v830_v14  ;;  %v854_v19 = vcombine.low %v837_v15, %v837_v15  ;;  %s575_s29 = scalar_lea.vmem %s5543_s2, %s4967_s27  ;;  %s5548_s27 = smov 104  }
  0x27   : > { %v855_v23 = vcombine.high %v837_v15, %v837_v15  ;;  %v5032_v32 = vld [vmem:[%s575_s29] sm:$0xff]  ;;  %s4823_s29 = smov 100  }
  0x28   : > { %v5018_v20 = vrot.slane %v838_v17, %v5015_v16  ;;  %v853_v21 = vrot.slane %v839_v18, %v5015_v16  ;;  %v862_v22 = vrot.slane %v854_v19, %v5015_v16 }
  0x29   : > { %v869_v28 = vrot.slane %v855_v23, %v5015_v16  ;;  %v821_v23 = vld [vmem:[%s5545_s3] sm:$0xff] }
  0x2a   : > { %672 = vrot.lane.b32.xlu1 %v4988_v2, %s5521_s20  ;;  %669 = vrot.lane.b32.xlu0 %v4988_v2, %s5523_s21  ;;  %v871_v24 = vcombine.high %v5018_v20, %v5018_v20  ;;  %v872_v25 = vcombine.low %v853_v21, %v853_v21  ;;  %v873_v26 = vcombine.high %v853_v21, %v853_v21  ;;  %s4820_s21 = smov 124   ;;  %s4822_s20 = smov 108  }
  0x2b   : > { %v874_v27 = vcombine.low %v862_v22, %v862_v22  ;;  %v875_v29 = vcombine.high %v862_v22, %v862_v22  ;;  %v876_v30 = vcombine.low %v869_v28, %v869_v28  ;;  %v877_v31 = vcombine.high %v869_v28, %v869_v28 }
  0x2e   : > { %879 = vrot.lane.b32.xlu0 %v871_v24, %s4813_s25  ;;  %883 = vrot.lane.b32.xlu1 %v872_v25, %s5527_s18  ;;  %s5528_s25 = smov 24   ;;  %s4819_s18 = smov 28  }
  0x32   : > { %887 = vrot.lane.b32.xlu0 %v873_v26, %s4815_s28  ;;  %891 = vrot.lane.b32.xlu1 %v874_v27, %s5529_s30  ;;  %s5544_s28 = smov 120   ;;  %s5550_s30 = smov 8  }
  0x36   : > { %895 = vrot.lane.b32.xlu0 %v875_v29, %s4817_s1  ;;  %899 = vrot.lane.b32.xlu1 %v876_v30, %s5528_s25  ;;  %v1623_v30 = vld [vmem:[%s5546_s4] sm:$0xff]  ;;  %s4821_s1 = smov 116   ;;  %s5551_s25 = smov 24  }
  0x3a   : > { %903 = vrot.lane.b32.xlu0 %v877_v31, %s4819_s18  ;;  %744 = vrot.lane.b32.xlu1 %v5032_v32, %s5544_s28  ;;  %v870_v31 = vcombine.low %v5018_v20, %v5018_v20  ;;  %s5547_s18 = smov 112  }
  0x94   : > { %v595_v33 = vpop.permute.xlu1 %594  ;;  %v589_v34 = vpop.permute.xlu0 %588 }
  0x95   : > { %v614_v35 = vcombine.high %v589_v34, %v595_v33  ;;  %v613_v38 = vcombine.low %v589_v34, %v595_v33 }
  0x97   : > { %v628_v41 = vrot.slane %v614_v35, %v5006_v10  ;;  %v621_v46 = vrot.slane %v613_v38, %v5006_v10 }
  0x98   : > { %v592_v36 = vpop.permute.xlu0 %591  ;;  %v667_v37 = vpop.permute.xlu1 %666 }
  0x99   : > { %v597_v39 = vcombine.low %v4982_v1, %v592_v36  ;;  %v598_v40 = vcombine.high %v4982_v1, %v592_v36 }
  0x9b   : > { %v605_v42 = vrot.slane %v597_v39, %v5006_v10  ;;  %v612_v43 = vrot.slane %v598_v40, %v5006_v10 }
  0x9c   : > { %v673_v44 = vpop.permute.xlu1 %672  ;;  %v670_v45 = vpop.permute.xlu0 %669 }
  0x9d   : > { %v645_v47 = vcombine.low %v612_v43, %v628_v41  ;;  %v646_v48 = vcombine.high %v612_v43, %v628_v41  ;;  %v692_v49 = vcombine.high %v667_v37, %v673_v44  ;;  %v676_v50 = vcombine.high %v4988_v2, %v670_v45 }
  0x9e   : > { %v630_v51 = vcombine.high %v605_v42, %v621_v46  ;;  %v629_v57 = vcombine.low %v605_v42, %v621_v46  ;;  %v691_v61 = vcombine.low %v667_v37, %v673_v44  ;;  %v675_v62 = vcombine.low %v4988_v2, %v670_v45 }
  0x9f   : > { %v653_v52 = vrot.slane %v645_v47, %v5015_v16  ;;  %v660_v53 = vrot.slane %v646_v48, %v5015_v16  ;;  %v706_v55 = vrot.slane %v692_v49, %v5006_v10  ;;  %v690_v56 = vrot.slane %v676_v50, %v5006_v10 }
  0xa0   : > { %v644_v58 = vrot.slane %v630_v51, %v5015_v16  ;;  %v637_v1 = vrot.slane %v629_v57, %v5015_v16  ;;  %v699_v7 = vrot.slane %v691_v61, %v5006_v10  ;;  %v683_v8 = vrot.slane %v675_v62, %v5006_v10  ;;  %v880_v33 = vpop.permute.xlu0 %879  ;;  %v884_v35 = vpop.permute.xlu1 %883 }
  0xa1   : > { %v664_v54 = vcombine.high %v660_v53, %v4806_v0  ;;  %v663_v60 = vcombine.high %v653_v52, %v4806_v0  ;;  %v724_v63 = vcombine.high %v690_v56, %v706_v55  ;;  %v723_v9 = vcombine.low %v690_v56, %v706_v55 }
  0xa2   : > { %v662_v5 = vcombine.high %v644_v58, %v4806_v0  ;;  %v661_v12 = vcombine.high %v637_v1, %v4806_v0  ;;  %v708_v13 = vcombine.high %v683_v8, %v699_v7  ;;  %v707_v18 = vcombine.low %v683_v8, %v699_v7 }
  0xa3   : > { %v931_v59 = vcombine.low %v660_v53, %v664_v54  ;;  %v930_v4 = vcombine.low %v653_v52, %v663_v60  ;;  %v738_v11 = vrot.slane %v724_v63, %v5015_v16  ;;  %v731_v14 = vrot.slane %v723_v9, %v5015_v16 }
  0xa4   : > { %v929_v2 = vcombine.low %v644_v58, %v662_v5  ;;  %v928_v17 = vcombine.low %v637_v1, %v661_v12  ;;  %v722_v19 = vrot.slane %v708_v13, %v5015_v16  ;;  %v715_v24 = vrot.slane %v707_v18, %v5015_v16  ;;  %v888_v37 = vpop.permute.xlu0 %887  ;;  %v892_v39 = vpop.permute.xlu1 %891 }
  0xa5   : > { %4505 = vmatpush3.xpose.msk.msra.mxu1 %vm908_vm1, %v931_v59  ;;  %v742_v15 = vcombine.high %v738_v11, %v4806_v0  ;;  %v741_v21 = vcombine.high %v731_v14, %v4806_v0  ;;  %v907_v34 = vsel %vm906_vm2, %v870_v31, %v880_v33 }
  0xa6   : > { %4506 = vmatprep.subr.mxu1 %v4806_v0  ;;  %v740_v25 = vcombine.high %v722_v19, %v4806_v0  ;;  %v739_v27 = vcombine.high %v715_v24, %v4806_v0  ;;  %v909_v36 = vsel %vm908_vm1, %v907_v34, %v884_v35 }
  0xa7   : > { %v1635_v22 = vcombine.low %v738_v11, %v742_v15  ;;  %v1634_v26 = vcombine.low %v731_v14, %v741_v21  ;;  %v911_v38 = vsel %vm910_vm3, %v909_v36, %v888_v37 }
  0xa8   : > { %v1633_v28 = vcombine.low %v722_v19, %v740_v25  ;;  %v1632_v29 = vcombine.low %v715_v24, %v739_v27  ;;  %v913_v40 = vsel %vm912_vm4, %v911_v38, %v892_v39  ;;  %v896_v41 = vpop.permute.xlu0 %895  ;;  %v900_v43 = vpop.permute.xlu1 %899 }
  0xa9   : > { %4507 = vmatpush3.xpose.msk.msra.mxu1 %vm908_vm1, %v930_v4  ;;  %v915_v42 = vsel %vm914_vm5, %v913_v40, %v896_v41 }
  0xaa   : > { %4508 = vmatprep.subr.mxu1 %v4806_v0  ;;  %v917_v20 = vsel %vm916_vm6, %v915_v42, %v900_v43 }
  0xac   : > { %v904_v44 = vpop.permute.xlu0 %903  ;;  %v5124_v52 = vpop.permute.xlu1 %744 }
  0xad   : > { %4509 = vmatpush3.xpose.msk.msra.mxu1 %vm908_vm1, %v929_v2  ;;  %v5097_v45 = vsel %vm918_vm7, %v917_v20, %v904_v44 }
  0xae   : > { %4510 = vmatprep.subr.mxu1 %v4806_v0 }
  0xb1   : > { %4511 = vmatpush3.xpose.msk.msra.mxu1 %vm908_vm1, %v928_v17 }
  0xb2   : > { %4515 = vmatprep.subr.mxu1 %v4806_v0 }
  0xb4   : > { %4513 = vmatmul.mubr.msk.f32.vlgmr.msra.gmra.mxu1 %vm908_vm1, %v821_v23 }
  0xb5   : > { %4516 = vmatpush3.xpose.msk.msra.mxu1 %vm908_vm1, %v1635_v22  ;;  %4523 = vmatprep.mubr.msk.f32.mxu1 %vm4810_vm0, %v4806_v0 }
  0xb6   : > { %4517 = vmatprep.subr.mxu1 %v4806_v0 }
  0xb9   : > { %4518 = vmatpush3.xpose.msk.msra.mxu1 %vm908_vm1, %v1634_v26 }
  0xba   : > { %4519 = vmatprep.subr.mxu1 %v4806_v0 }
  0xbd   : > { %4520 = vmatpush3.xpose.msk.msra.mxu1 %vm908_vm1, %v1633_v28 }
  0xbe   : > { %4521 = vmatprep.subr.mxu1 %v4806_v0 }
  0xc1   : > { %4522 = vmatpush3.xpose.msk.msra.mxu1 %vm908_vm1, %v1632_v29 }
  0xc2   : > { %4537 = vmatprep.subr.mxu1 %v4806_v0 }
  0xc4   : > { %4524 = vmatmul.mubr.msk.f32.vlgmr.msra.gmra.mxu1 %vm908_vm1, %v1623_v30 }
  0xc5   : > { %4539 = vmatprep.mubr.msk.f32.mxu1 %vm4810_vm0, %v4806_v0 }
 0x174   : > { %v1009_v46 = vpop.f32.mrf.mxu1 }
 0x175   : > { %v1010_v47 = vadd.f32 %v1009_v46, %v5097_v45 }
 0x176   : > { %v4514_v48 = vpop.f32.mrf.mxu1 }
 0x177   : > { %1017 = vrot.lane.b32.xlu0 %v1010_v47, %s5544_s28  ;;  %1014 = vrot.lane.b32.xlu1 %v1010_v47, %s4820_s21 }
 0x17b   : > { %1023 = vrot.lane.b32.xlu0 %v1010_v47, %s5547_s18  ;;  %1020 = vrot.lane.b32.xlu1 %v1010_v47, %s4821_s1 }
 0x17f   : > { %1029 = vrot.lane.b32.xlu0 %v1010_v47, %s5548_s27  ;;  %1026 = vrot.lane.b32.xlu1 %v1010_v47, %s4822_s20 }
 0x183   : > { %1032 = vrot.lane.b32.xlu1 %v1010_v47, %s4823_s29 }
 0x184   : > { %v1713_v49 = vpop.f32.mrf.mxu1 }
 0x185   : > { %v5108_v50 = vadd.f32 %v1713_v49, %v5097_v45 }
 0x186   : > { %v4525_v51 = vpop.f32.mrf.mxu1 }
 0x187   : > { %1718 = vrot.lane.b32.xlu0 %v5108_v50, %s4820_s21  ;;  %1721 = vrot.lane.b32.xlu1 %v5108_v50, %s5544_s28 }
 0x18b   : > { %1724 = vrot.lane.b32.xlu0 %v5108_v50, %s4821_s1  ;;  %1727 = vrot.lane.b32.xlu1 %v5108_v50, %s5547_s18 }
 0x18f   : > { %1730 = vrot.lane.b32.xlu0 %v5108_v50, %s4822_s20  ;;  %1733 = vrot.lane.b32.xlu1 %v5108_v50, %s5548_s27 }
 0x193   : > { %1736 = vrot.lane.b32.xlu0 %v5108_v50, %s4823_s29 }
 0x1e9   : > { %v1018_v53 = vpop.permute.xlu0 %1017  ;;  %v1015_v54 = vpop.permute.xlu1 %1014 }
 0x1ea   : > { %v1035_v60 = vcombine.low %v1010_v47, %v1018_v53  ;;  %v1036_v5 = vcombine.high %v1010_v47, %v1018_v53 }
 0x1ec   : > { %v1043_v7 = vrot.slane %v1035_v60, %v5006_v10  ;;  %v1050_v17 = vrot.slane %v1036_v5, %v5006_v10 }
 0x1ed   : > { %v1024_v55 = vpop.permute.xlu0 %1023  ;;  %v1021_v56 = vpop.permute.xlu1 %1020 }
 0x1ee   : > { %v1051_v57 = vcombine.low %v1015_v54, %v1021_v56  ;;  %v1052_v61 = vcombine.high %v1015_v54, %v1021_v56 }
 0x1f0   : > { %v1059_v62 = vrot.slane %v1051_v57, %v5006_v10  ;;  %v1066_v11 = vrot.slane %v1052_v61, %v5006_v10 }
 0x1f1   : > { %v1030_v58 = vpop.permute.xlu0 %1029  ;;  %v1027_v59 = vpop.permute.xlu1 %1026 }
 0x1f2   : > { %v1067_v63 = vcombine.low %v1024_v55, %v1030_v58  ;;  %v1068_v1 = vcombine.high %v1024_v55, %v1030_v58  ;;  %v1099_v14 = vcombine.low %v1043_v7, %v1059_v62  ;;  %v1100_v24 = vcombine.high %v1043_v7, %v1059_v62 }
 0x1f3   : > { %v1115_v25 = vcombine.low %v1050_v17, %v1066_v11  ;;  %v1116_v34 = vcombine.high %v1050_v17, %v1066_v11 }
 0x1f4   : > { %v1075_v2 = vrot.slane %v1067_v63, %v5006_v10  ;;  %v1082_v15 = vrot.slane %v1068_v1, %v5006_v10  ;;  %v1107_v22 = vrot.slane %v1099_v14, %v5015_v16  ;;  %v1114_v31 = vrot.slane %v1100_v24, %v5015_v16 }
 0x1f5   : > { %v1033_v4 = vpop.permute.xlu1 %1032  ;;  %v1123_v33 = vrot.slane %v1115_v25, %v5015_v16  ;;  %v1130_v38 = vrot.slane %v1116_v34, %v5015_v16 }
 0x1f6   : > { %v1083_v8 = vcombine.low %v1027_v59, %v1033_v4  ;;  %v1084_v9 = vcombine.high %v1027_v59, %v1033_v4 }
 0x1f8   : > { %v1091_v12 = vrot.slane %v1083_v8, %v5006_v10  ;;  %v1098_v13 = vrot.slane %v1084_v9, %v5006_v10 }
 0x1f9   : > { %v1719_v43 = vpop.permute.xlu0 %1718  ;;  %v1722_v44 = vpop.permute.xlu1 %1721 }
 0x1fa   : > { %v1131_v18 = vcombine.low %v1075_v2, %v1091_v12  ;;  %v1132_v19 = vcombine.high %v1075_v2, %v1091_v12  ;;  %v1147_v21 = vcombine.low %v1082_v15, %v1098_v13  ;;  %v1148_v26 = vcombine.high %v1082_v15, %v1098_v13 }
 0x1fb   : > { %v1739_v55 = vcombine.low %v5108_v50, %v1722_v44  ;;  %v1740_v4 = vcombine.high %v5108_v50, %v1722_v44 }
 0x1fc   : > { %v1139_v23 = vrot.slane %v1131_v18, %v5015_v16  ;;  %v1146_v29 = vrot.slane %v1132_v19, %v5015_v16  ;;  %v1155_v30 = vrot.slane %v1147_v21, %v5015_v16  ;;  %v1162_v37 = vrot.slane %v1148_v26, %v5015_v16 }
 0x1fd   : > { %v1725_v20 = vpop.permute.xlu0 %1724  ;;  %v1728_v47 = vpop.permute.xlu1 %1727  ;;  %v1747_v59 = vrot.slane %v1739_v55, %v5006_v10  ;;  %v1754_v13 = vrot.slane %v1740_v4, %v5006_v10 }
 0x1fe   : > { %v1164_v27 = vcombine.high %v1107_v22, %v1139_v23  ;;  %v1163_v28 = vcombine.low %v1107_v22, %v1139_v23  ;;  %v1165_v35 = vcombine.low %v1114_v31, %v1146_v29  ;;  %v1167_v36 = vcombine.low %v1123_v33, %v1155_v30 }
 0x1ff   : > { %v1166_v39 = vcombine.high %v1114_v31, %v1146_v29  ;;  %v1169_v40 = vcombine.low %v1130_v38, %v1162_v37  ;;  %v1168_v41 = vcombine.high %v1123_v33, %v1155_v30  ;;  %v1170_v42 = vcombine.high %v1130_v38, %v1162_v37 }
 0x200   : > { %1203 = vxpose.xlu0.b32.start.end [1/1] (short) (narrow) %v1164_v27, 8  ;;  %1171 = vxpose.xlu1.b32.start.end [1/1] (short) (narrow) %v1163_v28, 8  ;;  %v1755_v53 = vcombine.low %v1719_v43, %v1725_v20  ;;  %v1756_v62 = vcombine.high %v1719_v43, %v1725_v20 }
 0x201   : > { %v1731_v46 = vpop.permute.xlu0 %1730  ;;  %v1734_v49 = vpop.permute.xlu1 %1733 }
 0x202   : > { %v1771_v54 = vcombine.low %v1728_v47, %v1734_v49  ;;  %v1763_v57 = vrot.slane %v1755_v53, %v5006_v10  ;;  %v1772_v1 = vcombine.high %v1728_v47, %v1734_v49  ;;  %v1770_v9 = vrot.slane %v1756_v62, %v5006_v10 }
 0x204   : > { %1235 = vxpose.xlu0.b32.start.end [1/1] (short) (narrow) %v1165_v35, 8  ;;  %1299 = vxpose.xlu1.b32.start.end [1/1] (short) (narrow) %v1167_v36, 8  ;;  %v1779_v58 = vrot.slane %v1771_v54, %v5006_v10  ;;  %v1803_v63 = vcombine.low %v1747_v59, %v1763_v57  ;;  %v1786_v11 = vrot.slane %v1772_v1, %v5006_v10 }
 0x205   : > { %v1737_v48 = vpop.permute.xlu0 %1736  ;;  %v1804_v12 = vcombine.high %v1747_v59, %v1763_v57  ;;  %v1819_v18 = vcombine.low %v1754_v13, %v1770_v9  ;;  %v1820_v24 = vcombine.high %v1754_v13, %v1770_v9 }
 0x206   : > { %v1787_v51 = vcombine.low %v1731_v46, %v1737_v48  ;;  %v1788_v60 = vcombine.high %v1731_v46, %v1737_v48  ;;  %v1811_v2 = vrot.slane %v1803_v63, %v5015_v16 }
 0x207   : > { %v1818_v50 = vrot.slane %v1804_v12, %v5015_v16  ;;  %v1827_v23 = vrot.slane %v1819_v18, %v5015_v16  ;;  %v1834_v28 = vrot.slane %v1820_v24, %v5015_v16 }
 0x208   : > { %1267 = vxpose.xlu0.b32.start.end [1/1] (short) (narrow) %v1166_v39, 8  ;;  %1363 = vxpose.xlu1.b32.start.end [1/1] (short) (narrow) %v1169_v40, 8  ;;  %v1795_v56 = vrot.slane %v1787_v51, %v5006_v10  ;;  %v1802_v5 = vrot.slane %v1788_v60, %v5006_v10 }
 0x20a   : > { %v1835_v61 = vcombine.low %v1779_v58, %v1795_v56  ;;  %v1836_v8 = vcombine.high %v1779_v58, %v1795_v56  ;;  %v1851_v17 = vcombine.low %v1786_v11, %v1802_v5  ;;  %v1852_v22 = vcombine.high %v1786_v11, %v1802_v5 }
 0x20c   : > { %1331 = vxpose.xlu0.b32.start.end [1/1] (short) (narrow) %v1168_v41, 8  ;;  %v1843_v7 = vrot.slane %v1835_v61, %v5015_v16  ;;  %v1850_v15 = vrot.slane %v1836_v8, %v5015_v16  ;;  %v1859_v21 = vrot.slane %v1851_v17, %v5015_v16  ;;  %v1866_v27 = vrot.slane %v1852_v22, %v5015_v16 }
 0x20e   : > { %v1867_v14 = vcombine.low %v1811_v2, %v1843_v7  ;;  %v1870_v19 = vcombine.high %v1818_v50, %v1850_v15  ;;  %v1868_v25 = vcombine.high %v1811_v2, %v1843_v7  ;;  %v1872_v26 = vcombine.high %v1827_v23, %v1859_v21 }
 0x20f   : > { %v1869_v29 = vcombine.low %v1818_v50, %v1850_v15  ;;  %v1874_v30 = vcombine.high %v1834_v28, %v1866_v27  ;;  %v1871_v31 = vcombine.low %v1827_v23, %v1859_v21  ;;  %v1873_v33 = vcombine.low %v1834_v28, %v1866_v27 }
 0x210   : > { %1395 = vxpose.xlu0.b32.start.end [1/1] (short) (narrow) %v1170_v42, 8 }
 0x226   : > { %750 = vrot.lane.b32.xlu1 %v5032_v32, %s5548_s27 }
 0x239   : > { %747 = vrot.lane.b32.xlu0 %v5032_v32, %s5547_s18 }
 0x24f   : > { %1875 = vxpose.xlu1.b32.start.end [1/1] (short) (narrow) %v1867_v14, 8 }
 0x253   : > { %1971 = vxpose.xlu1.b32.start.end [1/1] (short) (narrow) %v1870_v19, 8 }
 0x257   : > { %1907 = vxpose.xlu0.b32.start.end [1/1] (short) (narrow) %v1868_v25, 8  ;;  %2035 = vxpose.xlu1.b32.start.end [1/1] (short) (narrow) %v1872_v26, 8 }
 0x25b   : > { %1939 = vxpose.xlu0.b32.start.end [1/1] (short) (narrow) %v1869_v29, 8  ;;  %2099 = vxpose.xlu1.b32.start.end [1/1] (short) (narrow) %v1874_v30, 8  ;;  %v2199_v29 = vld [vmem:[%s5505_s5] sm:$0xff] }
 0x25f   : > { %2003 = vxpose.xlu0.b32.start.end [1/1] (short) (narrow) %v1871_v31, 8 }
 0x263   : > { %2067 = vxpose.xlu0.b32.start.end [1/1] (short) (narrow) %v1873_v33, 8 }
 0x27c   : > { %v1219_v34 = vpop.trf.xlu0  ;;  %v1187_v35 = vpop.trf.xlu1 }
 0x280   : > { %v1251_v36 = vpop.trf.xlu0  ;;  %v1315_v37 = vpop.trf.xlu1 }
 0x281   : > { %v1427_v40 = vcombine.low %v1187_v35, %v1251_v36 }
 0x283   : > { %v1434_v20 = vrot.slane %v1427_v40, %v5006_v10 }
 0x284   : > { %v1283_v38 = vpop.trf.xlu0  ;;  %v1379_v41 = vpop.trf.xlu1 }
 0x285   : > { %v1435_v39 = vcombine.low %v1219_v34, %v1283_v38  ;;  %v1443_v44 = vcombine.low %v1315_v37, %v1379_v41 }
 0x287   : > { %v1442_v43 = vrot.slane %v1435_v39, %v5006_v10  ;;  %v1450_v49 = vrot.slane %v1443_v44, %v5006_v10 }
 0x288   : > { %v1347_v42 = vpop.trf.xlu0 }
 0x289   : > { %v1459_v47 = vcombine.low %v1434_v20, %v1442_v43  ;;  %v1460_v51 = vcombine.high %v1434_v20, %v1442_v43 }
 0x28b   : > { %v1467_v56 = vrot.slane %v1459_v47, %v5015_v16  ;;  %v1474_v58 = vrot.slane %v1460_v51, %v5015_v16 }
 0x28c   : > { %v1411_v46 = vpop.trf.xlu0 }
 0x28d   : > { %v1451_v48 = vcombine.low %v1347_v42, %v1411_v46 }
 0x28f   : > { %v1458_v53 = vrot.slane %v1451_v48, %v5006_v10 }
 0x291   : > { %v1475_v54 = vcombine.low %v1450_v49, %v1458_v53  ;;  %v1476_v55 = vcombine.high %v1450_v49, %v1458_v53 }
 0x293   : > { %v1483_v57 = vrot.slane %v1475_v54, %v5015_v16  ;;  %v1490_v59 = vrot.slane %v1476_v55, %v5015_v16 }
 0x295   : > { %v1492_v60 = vcombine.high %v1467_v56, %v1483_v57  ;;  %v1491_v61 = vcombine.low %v1467_v56, %v1483_v57  ;;  %v1494_v62 = vcombine.high %v1474_v58, %v1490_v59  ;;  %v1493_v63 = vcombine.low %v1474_v58, %v1490_v59 }
 0x297   : > { %1527 = vxpose.xlu1.b32.start.end [1/1] (short) (narrow) %v1492_v60, 8  ;;  %1495 = vxpose.xlu0.b32.start.end [1/1] (short) (narrow) %v1491_v61, 8 }
 0x298   : > { %v751_v1 = vpop.permute.xlu1 %750 }
 0x299   : > { %v770_v4 = vcombine.high %v5124_v52, %v751_v1  ;;  %v769_v7 = vcombine.low %v5124_v52, %v751_v1 }
 0x29b   : > { %1591 = vxpose.xlu1.b32.start.end [1/1] (short) (narrow) %v1494_v62, 8  ;;  %1559 = vxpose.xlu0.b32.start.end [1/1] (short) (narrow) %v1493_v63, 8  ;;  %v784_v11 = vrot.slane %v770_v4, %v5006_v10  ;;  %v777_v13 = vrot.slane %v769_v7, %v5006_v10 }
 0x2ab   : > { %v748_v5 = vpop.permute.xlu0 %747 }
 0x2ac   : > { %v753_v8 = vcombine.low %v5032_v32, %v748_v5  ;;  %v754_v9 = vcombine.high %v5032_v32, %v748_v5 }
 0x2ae   : > { %v761_v2 = vrot.slane %v753_v8, %v5006_v10  ;;  %v768_v12 = vrot.slane %v754_v9, %v5006_v10 }
 0x2b0   : > { %v801_v14 = vcombine.low %v768_v12, %v784_v11  ;;  %v802_v15 = vcombine.high %v768_v12, %v784_v11  ;;  %v786_v17 = vcombine.high %v761_v2, %v777_v13  ;;  %v785_v19 = vcombine.low %v761_v2, %v777_v13 }
 0x2b2   : > { %v809_v50 = vrot.slane %v801_v14, %v5015_v16  ;;  %v816_v18 = vrot.slane %v802_v15, %v5015_v16  ;;  %v800_v32 = vrot.slane %v786_v17, %v5015_v16  ;;  %v793_v23 = vrot.slane %v785_v19, %v5015_v16 }
 0x2b4   : > { %v820_v52 = vcombine.high %v816_v18, %v4806_v0  ;;  %v819_v22 = vcombine.high %v809_v50, %v4806_v0  ;;  %v818_v25 = vcombine.high %v800_v32, %v4806_v0  ;;  %v817_v27 = vcombine.high %v793_v23, %v4806_v0 }
 0x2b6   : > { %v2211_v21 = vcombine.low %v816_v18, %v820_v52  ;;  %v2210_v24 = vcombine.low %v809_v50, %v819_v22  ;;  %v2209_v26 = vcombine.low %v800_v32, %v818_v25  ;;  %v2208_v28 = vcombine.low %v793_v23, %v817_v27 }
 0x2b7   : > { %v5237_v50 = vand.u32 127, %v577_v3 }
 0x2b8   : > { %4527 = vmatpush3.xpose.msk.msra.mxu0 %vm908_vm1, %v2211_v21 }
 0x2b9   : > { %4528 = vmatprep.subr.mxu0 %v4806_v0  ;;  %vm583_vm8 = vcmp.ge.s32.totalorder %v5003_v6, %v5237_v50 }
 0x2bc   : > { %4529 = vmatpush3.xpose.msk.msra.mxu0 %vm908_vm1, %v2210_v24 }
 0x2bd   : > { %4530 = vmatprep.subr.mxu0 %v4806_v0 }
 0x2c0   : > { %4531 = vmatpush3.xpose.msk.msra.mxu0 %vm908_vm1, %v2209_v26 }
 0x2c1   : > { %4532 = vmatprep.subr.mxu0 %v4806_v0 }
 0x2c4   : > { %4533 = vmatpush3.xpose.msk.msra.mxu0 %vm908_vm1, %v2208_v28 }
 0x2c5   : > { %4557 = vmatprep.subr.mxu0 %v4806_v0 }
 0x2c7   : > { %4535 = vmatmul.mubr.msk.f32.vlgmr.msra.gmra.mxu0 %vm908_vm1, %v2199_v29 }
 0x2c8   : > { %4559 = vmatprep.mubr.msk.f32.mxu0 %vm4810_vm0, %v4806_v0 }
 0x2cb   : > { %v1891_v30 = vpop.trf.xlu1 }
 0x2cf   : > { %v1987_v31 = vpop.trf.xlu1 }
 0x2d3   : > { %v1923_v33 = vpop.trf.xlu0  ;;  %v2051_v34 = vpop.trf.xlu1 }
 0x2d4   : > { %v2139_v37 = vcombine.low %v1923_v33, %v1987_v31 }
 0x2d6   : > { %v2146_v41 = vrot.slane %v2139_v37, %v5006_v10 }
 0x2d7   : > { %v1955_v35 = vpop.trf.xlu0  ;;  %v2115_v38 = vpop.trf.xlu1 }
 0x2d8   : > { %v2131_v36 = vcombine.low %v1891_v30, %v1955_v35  ;;  %v2155_v42 = vcombine.low %v2051_v34, %v2115_v38 }
 0x2da   : > { %v2138_v40 = vrot.slane %v2131_v36, %v5006_v10  ;;  %v2162_v46 = vrot.slane %v2155_v42, %v5006_v10 }
 0x2db   : > { %v2019_v39 = vpop.trf.xlu0 }
 0x2dc   : > { %v2163_v20 = vcombine.low %v2138_v40, %v2146_v41  ;;  %v2164_v54 = vcombine.high %v2138_v40, %v2146_v41 }
 0x2de   : > { %v2171_v48 = vrot.slane %v2163_v20, %v5015_v16  ;;  %v2178_v56 = vrot.slane %v2164_v54, %v5015_v16 }
 0x2df   : > { %v2083_v43 = vpop.trf.xlu0 }
 0x2e0   : > { %v2147_v44 = vcombine.low %v2019_v39, %v2083_v43 }
 0x2e2   : > { %v2154_v47 = vrot.slane %v2147_v44, %v5006_v10 }
 0x2e4   : > { %v2179_v49 = vcombine.low %v2154_v47, %v2162_v46  ;;  %v2180_v55 = vcombine.high %v2154_v47, %v2162_v46 }
 0x2e6   : > { %v2187_v51 = vrot.slane %v2179_v49, %v5015_v16  ;;  %v2194_v57 = vrot.slane %v2180_v55, %v5015_v16 }
 0x2e8   : > { %v2195_v53 = vcombine.low %v2171_v48, %v2187_v51  ;;  %v2196_v60 = vcombine.high %v2171_v48, %v2187_v51  ;;  %v2197_v1 = vcombine.low %v2178_v56, %v2194_v57  ;;  %v2198_v5 = vcombine.high %v2178_v56, %v2194_v57 }
 0x2ea   : > { %4538 = vmatpush3.msra.mxu1 %v2195_v53 }
 0x2eb   : > { %4542 = vmatprep.subr.mxu1 %v4806_v0 }
 0x313   : > { %v1511_v58 = vpop.trf.xlu0  ;;  %v1543_v59 = vpop.trf.xlu1 }
 0x314   : > { %v2903_v61 = vmul.f32 0.17677669, %v1511_v58  ;;  %v2904_v62 = vmul.f32 0.17677669, %v1543_v59 }
 0x316   : > { %4540 = vmatmul.mubr.msk.f32.vlgmr.msra.gmra.mxu1 %vm908_vm1, %v2903_v61 }
 0x317   : > { %4543 = vmatpush3.msra.mxu1 %v2196_v60  ;;  %4544 = vmatprep.mubr.msk.f32.mxu1 %vm4810_vm0, %v4806_v0  ;;  %v1575_v63 = vpop.trf.xlu0  ;;  %v1607_v7 = vpop.trf.xlu1 }
 0x318   : > { %4547 = vmatprep.subr.mxu1 %v4806_v0  ;;  %v2905_v4 = vmul.f32 0.17677669, %v1575_v63  ;;  %v2906_v8 = vmul.f32 0.17677669, %v1607_v7 }
 0x31a   : > { %4545 = vmatmul.mubr.msk.f32.vlgmr.msra.gmra.mxu1 %vm908_vm1, %v2904_v62 }
 0x31b   : > { %4548 = vmatpush3.msra.mxu1 %v2197_v1  ;;  %4549 = vmatprep.mubr.msk.f32.mxu1 %vm4810_vm0, %v4806_v0 }
 0x31c   : > { %4552 = vmatprep.subr.mxu1 %v4806_v0 }
 0x31e   : > { %4550 = vmatmul.mubr.msk.f32.vlgmr.msra.gmra.mxu1 %vm908_vm1, %v2905_v4 }
 0x31f   : > { %4553 = vmatpush3.msra.mxu1 %v2198_v5  ;;  %4554 = vmatprep.mubr.msk.f32.mxu1 %vm4810_vm0, %v4806_v0 }
 0x320   : > { %4562 = vmatprep.subr.mxu1 %v4806_v0 }
 0x322   : > { %4555 = vmatmul.mubr.msk.f32.vlgmr.msra.gmra.mxu1 %vm908_vm1, %v2906_v8 }
 0x323   : > { %4564 = vmatprep.mubr.msk.f32.mxu1 %vm4810_vm0, %v4806_v0 }
 0x387   : > { %v2289_v9 = vpop.f32.mrf.mxu0 }
 0x388   : > { %v2290_v11 = vadd.f32 %v2289_v9, %v5097_v45 }
 0x389   : > { %v4536_v2 = vpop.f32.mrf.mxu0 }
 0x38a   : > { %2297 = vrot.lane.b32.xlu0 %v2290_v11, %s5544_s28  ;;  %2294 = vrot.lane.b32.xlu1 %v2290_v11, %s4820_s21  ;;  %s558_s28 = sand.u32 1, %s4788_s22  }
 0x38b   : > { %s4400_s21 = sshll.u32 %s558_s28, 3  ;;  %s4286_s4 = scalar_lea.sflag [#allocation3], %s558_s28 }
 0x38e   : > { %2306 = vrot.lane.b32.xlu0 %v2290_v11, %s4822_s20  ;;  %2300 = vrot.lane.b32.xlu1 %v2290_v11, %s4821_s1  ;;  %s4824_s1 = smov [#allocation2]  }
 0x392   : > { %2312 = vrot.lane.b32.xlu0 %v2290_v11, %s4823_s29  ;;  %2303 = vrot.lane.b32.xlu1 %v2290_v11, %s5547_s18  ;;  %s5549_s29 = smov 16  }
 0x396   : > { %2309 = vrot.lane.b32.xlu1 %v2290_v11, %s5548_s27  ;;  %s4732_s27 = sshll.u32 %s4824_s1, 4  ;;  %s4733_s27 = int_to_ptr.vmem [resolvable:$false] %s4732_s27 }
 0x3d6   : > { %v5234_v12 = vpop.f32.mrf.mxu1 }
 0x3d8   : > { %v4541_v13 = vpop.f32.mrf.mxu1 }
 0x3da   : > { %v3049_v14 = vpop.f32.mrf.mxu1 }
 0x3db   : > { %v3202_v9 = vsel %vm583_vm8, %v3049_v14, -1e+20 }
 0x3dc   : > { %v4546_v45 = vpop.f32.mrf.mxu1 }
 0x3dd   : > { %v3201_v45 = vsel %vm583_vm8, %v5234_v12, -1e+20 }
 0x3de   : > { %v3122_v15 = vpop.f32.mrf.mxu1 }
 0x3df   : > { %v3203_v2 = vsel %vm583_vm8, %v3122_v15, -1e+20 }
 0x3e0   : > { %v4551_v17 = vpop.f32.mrf.mxu1  ;;  %v3211_v13 = vsel %vm908_vm1, %v3203_v2, -inf }
 0x3e1   : > { %v3205_v17 = vsel %vm908_vm1, %v3201_v45, -inf }
 0x3e2   : > { %v3195_v18 = vpop.f32.mrf.mxu1 }
 0x3e3   : > { %v5244_v52 = vsel %vm583_vm8, %v3195_v18, -1e+20 }
 0x3e4   : > { %v4556_v19 = vpop.f32.mrf.mxu1  ;;  %v3214_v6 = vsel %vm908_vm1, %v5244_v52, -inf }
 0x3fc   : > { %v2298_v32 = vpop.permute.xlu0 %2297  ;;  %v2295_v21 = vpop.permute.xlu1 %2294 }
 0x3fd   : > { %v2316_v22 = vcombine.high %v2290_v11, %v2298_v32  ;;  %v2315_v28 = vcombine.low %v2290_v11, %v2298_v32  ;;  %v3208_v11 = vsel %vm908_vm1, %v3202_v9, -inf }
 0x3ff   : > { %v2330_v3 = vrot.slane %v2316_v22, %v5006_v10  ;;  %v2323_v36 = vrot.slane %v2315_v28, %v5006_v10 }
 0x400   : > { %v2307_v23 = vpop.permute.xlu0 %2306  ;;  %v2301_v24 = vpop.permute.xlu1 %2300 }
 0x401   : > { %v2332_v25 = vcombine.high %v2295_v21, %v2301_v24  ;;  %v2331_v26 = vcombine.low %v2295_v21, %v2301_v24 }
 0x403   : > { %v2346_v27 = vrot.slane %v2332_v25, %v5006_v10  ;;  %v2339_v33 = vrot.slane %v2331_v26, %v5006_v10 }
 0x404   : > { %v2313_v29 = vpop.permute.xlu0 %2312  ;;  %v2304_v30 = vpop.permute.xlu1 %2303 }
 0x405   : > { %v2396_v31 = vcombine.high %v2330_v3, %v2346_v27  ;;  %v2363_v34 = vcombine.low %v2307_v23, %v2313_v29  ;;  %v2364_v35 = vcombine.high %v2307_v23, %v2313_v29  ;;  %v2379_v40 = vcombine.low %v2323_v36, %v2339_v33 }
 0x406   : > { %v2395_v49 = vcombine.low %v2330_v3, %v2346_v27  ;;  %v2380_v54 = vcombine.high %v2323_v36, %v2339_v33 }
 0x407   : > { %v2371_v41 = vrot.slane %v2363_v34, %v5006_v10  ;;  %v2378_v42 = vrot.slane %v2364_v35, %v5006_v10  ;;  %v2387_v51 = vrot.slane %v2379_v40, %v5015_v16  ;;  %v2410_v56 = vrot.slane %v2396_v31, %v5015_v16 }
 0x408   : > { %v2310_v37 = vpop.permute.xlu1 %2309  ;;  %v2403_v63 = vrot.slane %v2395_v49, %v5015_v16  ;;  %v2394_v1 = vrot.slane %v2380_v54, %v5015_v16 }
 0x409   : > { %v2347_v38 = vcombine.low %v2304_v30, %v2310_v37  ;;  %v2348_v39 = vcombine.high %v2304_v30, %v2310_v37 }
 0x40b   : > { %v2355_v43 = vrot.slane %v2347_v38, %v5006_v10  ;;  %v2362_v20 = vrot.slane %v2348_v39, %v5006_v10 }
 0x40d   : > { %v2411_v44 = vcombine.low %v2355_v43, %v2371_v41  ;;  %v2428_v46 = vcombine.high %v2362_v20, %v2378_v42  ;;  %v2427_v47 = vcombine.low %v2362_v20, %v2378_v42  ;;  %v2412_v48 = vcombine.high %v2355_v43, %v2371_v41 }
 0x40f   : > { %v2419_v53 = vrot.slane %v2411_v44, %v5015_v16  ;;  %v2442_v55 = vrot.slane %v2428_v46, %v5015_v16  ;;  %v2435_v59 = vrot.slane %v2427_v47, %v5015_v16  ;;  %v2426_v60 = vrot.slane %v2412_v48, %v5015_v16 }
 0x411   : > { %v2444_v57 = vcombine.high %v2387_v51, %v2419_v53  ;;  %v2443_v58 = vcombine.low %v2387_v51, %v2419_v53  ;;  %v2449_v61 = vcombine.low %v2410_v56, %v2442_v55  ;;  %v2450_v62 = vcombine.high %v2410_v56, %v2442_v55 }
 0x412   : > { %v2447_v4 = vcombine.low %v2403_v63, %v2435_v59  ;;  %v2445_v5 = vcombine.low %v2394_v1, %v2426_v60  ;;  %v2446_v7 = vcombine.high %v2394_v1, %v2426_v60  ;;  %v2448_v8 = vcombine.high %v2403_v63, %v2435_v59 }
 0x413   : > { %2483 = vxpose.xlu1.b32.start.end [1/1] (short) (narrow) %v2444_v57, 8  ;;  %2451 = vxpose.xlu0.b32.start.end [1/1] (short) (narrow) %v2443_v58, 8 }
 0x417   : > { %2579 = vxpose.xlu1.b32.start.end [1/1] (short) (narrow) %v2447_v4, 8  ;;  %2515 = vxpose.xlu0.b32.start.end [1/1] (short) (narrow) %v2445_v5, 8 }
 0x41b   : > { %2547 = vxpose.xlu0.b32.start.end [1/1] (short) (narrow) %v2446_v7, 8 }
 0x41f   : > { %2611 = vxpose.xlu0.b32.start.end [1/1] (short) (narrow) %v2448_v8, 8 }
 0x43e   : > { %3209 = vmax.xlane.f32.xlu1 %v3208_v11 }
 0x442   : > { %3212 = vmax.xlane.f32.xlu1 %v3211_v13 }
 0x44c   : > { %3206 = vmax.xlane.f32.xlu0 %v3205_v17 }
 0x475   : > { %2643 = vxpose.xlu1.b32.start.end [1/1] (short) (narrow) %v2449_v61, 8 }
 0x479   : > { %2675 = vxpose.xlu0.b32.start.end [1/1] (short) (narrow) %v2450_v62, 8 }
 0x48f   : > { %v2467_v14 = vpop.trf.xlu0  ;;  %v2499_v32 = vpop.trf.xlu1 }
 0x493   : > { %v2531_v18 = vpop.trf.xlu0  ;;  %v2595_v12 = vpop.trf.xlu1 }
 0x494   : > { %v2707_v19 = vcombine.low %v2467_v14, %v2531_v18 }
 0x496   : > { %v2714_v22 = vrot.slane %v2707_v19, %v5006_v10 }
 0x497   : > { %v2563_v21 = vpop.trf.xlu0 }
 0x498   : > { %v2715_v15 = vcombine.low %v2499_v32, %v2563_v21 }
 0x49a   : > { %v2722_v23 = vrot.slane %v2715_v15, %v5006_v10 }
 0x49b   : > { %v2627_v25 = vpop.trf.xlu0 }
 0x49c   : > { %v2740_v24 = vcombine.high %v2714_v22, %v2722_v23  ;;  %v2739_v39 = vcombine.low %v2714_v22, %v2722_v23 }
 0x49e   : > { %v2747_v44 = vrot.slane %v2739_v39, %v5015_v16  ;;  %v2754_v46 = vrot.slane %v2740_v24, %v5015_v16 }
 0x4a6   : > { %3215 = vmax.xlane.f32.xlu0 %v3214_v6 }
 0x4c7   : > { %v3210_v50 = vpop.xlane.xlu1 %3209 }
 0x4c8   : > { %v3218_v55 = vsub.f32 %v3202_v9, %v3210_v50 }
 0x4ca   : > { %v3223_v56 = vmul.f32 1.442695, %v3218_v55 }
 0x4cb   : > { %v3213_v26 = vpop.xlane.xlu1 %3212 }
 0x4cc   : > { %v3219_v3 = vsub.f32 %v3203_v2, %v3213_v26 }
 0x4ce   : > { %v3225_v29 = vmul.f32 1.442695, %v3219_v3 }
 0x4d5   : > { %v3207_v27 = vpop.xlane.xlu0 %3206 }
 0x4d6   : > { %v3217_v28 = vsub.f32 %v3201_v45, %v3207_v27 }
 0x4d8   : > { %v3221_v30 = vmul.f32 1.442695, %v3217_v28  ;;  %v3963_v28 = vld [vmem:[%s5506_s6 + $0x18] sm:$0xff] }
 0x4da   : > { %4707 = vpow2.f32 %v3221_v30 }
 0x4db   : > { %4709 = vpow2.f32 %v3225_v29 }
 0x4dc   : > { %4711 = vpow2.f32 %v3223_v56 }
 0x4e7   : > { %v4708_v31 = vpop.eup %4707 }
 0x4e8   : > { %v3229_v33 = vsel %vm908_vm1, %v4708_v31, 0.0  ;;  %v5280_v34 = vpop.eup %4709 }
 0x4e9   : > { %3230 = vadd.xlane.f32.xlu1 %v3229_v33  ;;  %v3235_v35 = vsel %vm908_vm1, %v5280_v34, 0.0  ;;  %v4712_v57 = vpop.eup %4711 }
 0x4ea   : > { %v3232_v58 = vsel %vm908_vm1, %v4712_v57, 0.0 }
 0x4ed   : > { %3236 = vadd.xlane.f32.xlu1 %v3235_v35 }
 0x4f1   : > { %v2659_v36 = vpop.trf.xlu1 }
 0x4f2   : > { %v2723_v37 = vcombine.low %v2595_v12, %v2659_v36 }
 0x4f4   : > { %v2730_v40 = vrot.slane %v2723_v37, %v5006_v10 }
 0x4f5   : > { %v2691_v38 = vpop.trf.xlu0 }
 0x4f6   : > { %v2731_v41 = vcombine.low %v2627_v25, %v2691_v38 }
 0x4f8   : > { %v2738_v42 = vrot.slane %v2731_v41, %v5006_v10 }
 0x4fa   : > { %v2755_v43 = vcombine.low %v2730_v40, %v2738_v42  ;;  %v2756_v20 = vcombine.high %v2730_v40, %v2738_v42 }
 0x4fc   : > { %v2763_v47 = vrot.slane %v2755_v43, %v5015_v16  ;;  %v2770_v48 = vrot.slane %v2756_v20, %v5015_v16 }
 0x4fe   : > { %v2771_v49 = vcombine.low %v2747_v44, %v2763_v47  ;;  %v2773_v51 = vcombine.low %v2754_v46, %v2770_v48  ;;  %v2774_v53 = vcombine.high %v2754_v46, %v2770_v48  ;;  %v2772_v54 = vcombine.high %v2747_v44, %v2763_v47  ;;  %v3962_v46 = vld [vmem:[%s5506_s6 + $0x10] sm:$0xff]  ;;  %v3961_v47 = vld [vmem:[%s5506_s6 + $0x8] sm:$0xff] }
 0x500   : > { %2775 = vxpose.xlu0.b32.start.end [1/1] (short) (narrow) %v2771_v49, 8 }
 0x52d   : > { %3233 = vadd.xlane.f32.xlu0 %v3232_v58  ;;  %v3960_v58 = vld [vmem:[%s5506_s6] sm:$0xff] }
 0x52f   : > { %v3216_v59 = vpop.xlane.xlu0 %3215 }
 0x530   : > { %v3220_v60 = vsub.f32 %v5244_v52, %v3216_v59 }
 0x532   : > { %v3227_v61 = vmul.f32 1.442695, %v3220_v60 }
 0x534   : > { %4713 = vpow2.f32 %v3227_v61 }
 0x541   : > { %v4714_v62 = vpop.eup %4713 }
 0x542   : > { %v3238_v63 = vsel %vm908_vm1, %v4714_v62, 0.0 }
 0x543   : > { %3239 = vadd.xlane.f32.xlu1 %v3238_v63 }
 0x55a   : > { %2839 = vxpose.xlu0.b32.start.end [1/1] (short) (narrow) %v2773_v51, 8 }
 0x55e   : > { %2871 = vxpose.xlu0.b32.start.end [1/1] (short) (narrow) %v2774_v53, 8 }
 0x572   : > { %v3231_v1 = vpop.xlane.xlu1 %3230 }
 0x573   : > { %4715 = vrcp.f32 %v3231_v1 }
 0x576   : > { %2807 = vxpose.xlu1.b32.start.end [1/1] (short) (narrow) %v2772_v54, 8  ;;  %v3237_v2 = vpop.xlane.xlu1 %3236 }
 0x57c   : > { %v2791_v4 = vpop.trf.xlu0 }
 0x57d   : > { %3249 = vxpose.xlu1.b32.start.end [1/1] (short) (narrow) %v2791_v4, 8 }
 0x580   : > { %v4716_v5 = vpop.eup %4715 }
 0x581   : > { %v3245_v7 = vmul.f32 %v4716_v5, %v4708_v31 }
 0x583   : > { %4558 = vmatpush3.xpose.msk.msra.mxu0 %vm908_vm1, %v3245_v7 }
 0x584   : > { %4567 = vmatprep.subr.mxu0 %v4806_v0 }
 0x5b6   : > { %v3234_v52 = vpop.xlane.xlu0 %3233 }
 0x5b7   : > { %4717 = vrcp.f32 %v3234_v52 }
 0x5b8   : > { %4719 = vrcp.f32 %v3237_v2 }
 0x5c4   : > { %v4718_v8 = vpop.eup %4717 }
 0x5c5   : > { %v3246_v9 = vmul.f32 %v4718_v8, %v4712_v57  ;;  %v4720_v14 = vpop.eup %4719 }
 0x5c6   : > { %v3247_v19 = vmul.f32 %v4720_v14, %v5280_v34 }
 0x5c7   : > { %4563 = vmatpush3.xpose.msk.msra.mxu1 %vm908_vm1, %v3246_v9 }
 0x5c8   : > { %4572 = vmatprep.subr.mxu1 %v4806_v0 }
 0x5cc   : > { %v3240_v13 = vpop.xlane.xlu1 %3239 }
 0x5cd   : > { %4721 = vrcp.f32 %v3240_v13 }
 0x5d6   : > { %v2855_v11 = vpop.trf.xlu0 }
 0x5d7   : > { %3465 = vxpose.xlu1.b32.start.end [1/1] (short) (narrow) %v2855_v11, 8 }
 0x5da   : > { %v2887_v17 = vpop.trf.xlu0  ;;  %v4722_v21 = vpop.eup %4721 }
 0x5db   : > { %v3248_v22 = vmul.f32 %v4722_v21, %v4714_v62 }
 0x5f2   : > { %v2823_v45 = vpop.trf.xlu1 }
 0x5f3   : > { %3357 = vxpose.xlu0.b32.start.end [1/1] (short) (narrow) %v2823_v45, 8 }
 0x5f7   : > { %3573 = vxpose.xlu0.b32.start.end [1/1] (short) (narrow) %v2887_v17, 8 }
 0x5f9   : > { %v3265_v18 = vpop.trf.xlu1 }
 0x5fa   : > { %4560 = vmatmul.mubr.msk.f32.vlgmr.msra.gmra.mxu0 %vm908_vm1, %v3265_v18 }
 0x5fb   : > { %4568 = vmatpush3.xpose.msk.msra.mxu0 %vm908_vm1, %v3247_v19  ;;  %4569 = vmatprep.mubr.msk.f32.mxu0 %vm4810_vm0, %v4806_v0 }
 0x5fc   : > { %4577 = vmatprep.subr.mxu0 %v4806_v0 }
 0x653   : > { %v3481_v32 = vpop.trf.xlu1 }
 0x654   : > { %4570 = vmatmul.mubr.msk.f32.vlgmr.msra.gmra.mxu0 %vm908_vm1, %v3481_v32  ;;  %v4433_v32 = vld [vmem:[%s5507_s7] ss:$0 sm:$0xff] }
 0x655   : > { %4585 = vmatprep.mubr.msk.f32.mxu0 %vm4810_vm0, %v4806_v0  ;;  %4578 = vmatpush3.msra.mxu0 %v3963_v28  ;;  %v4078_v28 = vld [vmem:[%s5510_s10 + $0x10] sm:$0xff] }
 0x656   : > { %4579 = vmatprep.subr.mxu0 %v4806_v0 }
 0x657   : > { %4580 = vmatpush3.msra.mxu0 %v3962_v46 }
 0x658   : > { %4581 = vmatprep.subr.mxu0 %v4806_v0 }
 0x659   : > { %4582 = vmatpush3.msra.mxu0 %v3961_v47 }
 0x65a   : > { %4583 = vmatprep.subr.mxu0 %v4806_v0 }
 0x65b   : > { %4584 = vmatpush3.msra.mxu0 %v3960_v58  ;;  %v4161_v58 = vld [vmem:[%s5512_s12] sm:$0xff] }
 0x65c   : > { %4599 = vmatprep.subr.mxu0 %v4806_v0 }
 0x66f   : > { %v3373_v15 = vpop.trf.xlu0 }
 0x670   : > { %4565 = vmatmul.mubr.msk.f32.vlgmr.msra.gmra.mxu1 %vm908_vm1, %v3373_v15 }
 0x671   : > { %4573 = vmatpush3.xpose.msk.msra.mxu1 %vm908_vm1, %v3248_v22  ;;  %4574 = vmatprep.mubr.msk.f32.mxu1 %vm4810_vm0, %v4806_v0 }
 0x672   : > { %4588 = vmatprep.subr.mxu1 %v4806_v0 }
 0x673   : > { %v3589_v23 = vpop.trf.xlu0 }
 0x674   : > { %4575 = vmatmul.mubr.msk.f32.vlgmr.msra.gmra.mxu1 %vm908_vm1, %v3589_v23  ;;  %v4727_v23 = vld [vmem:[%s4973_s17] sm:$0xff]  ;;  %s4443_s17 = sshll.u32 %s4796_s24, 7  ;;  %s4734_s24 = scalar_lea.vmem %s4733_s27, 256 }
 0x675   : > { %4596 = vmatprep.mubr.msk.f32.mxu1 %vm4810_vm0, %v4806_v0  ;;  %s4298_s3 = scalar_lea.hbm %s5516_s16, %s4443_s17 }
 0x6ba   : > { %v3353_v24 = vpop.f32.mrf.mxu0 }
 0x6bb   : > { %3681 = vxpose.xlu1.b32.start.end [1/1] (short) (narrow) %v3353_v24, 8 }
 0x6bc   : > { %v4561_v6 = vpop.f32.mrf.mxu0 }
 0x714   : > { %v3569_v12 = vpop.f32.mrf.mxu0 }
 0x715   : > { %3745 = vxpose.xlu1.b32.start.end [1/1] (short) (narrow) %v3569_v12, 8 }
 0x716   : > { %v4571_v50 = vpop.f32.mrf.mxu0 }
 0x730   : > { %v3461_v25 = vpop.f32.mrf.mxu1 }
 0x731   : > { %3713 = vxpose.xlu0.b32.start.end [1/1] (short) (narrow) %v3461_v25, 8 }
 0x732   : > { %v4566_v26 = vpop.f32.mrf.mxu1 }
 0x734   : > { %v3677_v3 = vpop.f32.mrf.mxu1 }
 0x735   : > { %3777 = vxpose.xlu0.b32.start.end [1/1] (short) (narrow) %v3677_v3, 8 }
 0x736   : > { %v4576_v27 = vpop.f32.mrf.mxu1 }
 0x737   : > { %v3697_v29 = vpop.trf.xlu1  ;;  %v4079_v27 = vld [vmem:[%s5510_s10 + $0x18] sm:$0xff] }
 0x738   : > { %4589 = vmatpush3.msra.mxu1 %v4079_v27 }
 0x739   : > { %4590 = vmatprep.subr.mxu1 %v4806_v0 }
 0x73a   : > { %4591 = vmatpush3.msra.mxu1 %v4078_v28 }
 0x73b   : > { %4592 = vmatprep.subr.mxu1 %v4806_v0 }
 0x791   : > { %v3761_v30 = vpop.trf.xlu1 }
 0x792   : > { %v3809_v33 = vcombine.low %v3697_v29, %v3761_v30  ;;  %v3810_v34 = vcombine.high %v3697_v29, %v3761_v30  ;;  %v4077_v29 = vld [vmem:[%s5510_s10 + $0x8] sm:$0xff]  ;;  %v4076_v30 = vld [vmem:[%s5510_s10] sm:$0xff] }
 0x793   : > { %4593 = vmatpush3.msra.mxu1 %v4077_v29 }
 0x794   : > { %v3817_v38 = vrot.slane %v3809_v33, %v5006_v10  ;;  %v3824_v39 = vrot.slane %v3810_v34, %v5006_v10  ;;  %4594 = vmatprep.subr.mxu1 %v4806_v0  ;;  %v4175_v33 = vld [vmem:[%s5512_s12 + $0x70] sm:$0xff]  ;;  %v4174_v34 = vld [vmem:[%s5512_s12 + $0x68] sm:$0xff] }
 0x795   : > { %4595 = vmatpush3.msra.mxu1 %v4076_v30 }
 0x7ad   : > { %v3729_v31 = vpop.trf.xlu0 }
 0x7b1   : > { %v3793_v35 = vpop.trf.xlu0 }
 0x7b2   : > { %v3825_v36 = vcombine.low %v3729_v31, %v3793_v35  ;;  %v3826_v37 = vcombine.high %v3729_v31, %v3793_v35  ;;  %v4176_v31 = vld [vmem:[%s5512_s12 + $0x78] sm:$0xff]  ;;  %v4173_v35 = vld [vmem:[%s5512_s12 + $0x60] sm:$0xff] }
 0x7b4   : > { %v3833_v40 = vrot.slane %v3825_v36, %v5006_v10  ;;  %v3840_v41 = vrot.slane %v3826_v37, %v5006_v10  ;;  %v4172_v36 = vld [vmem:[%s5512_s12 + $0x58] sm:$0xff]  ;;  %v4171_v37 = vld [vmem:[%s5512_s12 + $0x50] sm:$0xff] }
 0x7b6   : > { %v3841_v42 = vcombine.low %v3817_v38, %v3833_v40  ;;  %v3842_v43 = vcombine.high %v3817_v38, %v3833_v40  ;;  %v3857_v20 = vcombine.low %v3824_v39, %v3840_v41  ;;  %v3858_v44 = vcombine.high %v3824_v39, %v3840_v41  ;;  %v4170_v38 = vld [vmem:[%s5512_s12 + $0x48] sm:$0xff]  ;;  %v4169_v39 = vld [vmem:[%s5512_s12 + $0x40] sm:$0xff]  ;;  %v4168_v40 = vld [vmem:[%s5512_s12 + $0x38] sm:$0xff] }
 0x7b7   : > { %v4167_v41 = vld [vmem:[%s5512_s12 + $0x30] sm:$0xff] }
 0x7b8   : > { %v3849_v48 = vrot.slane %v3841_v42, %v5015_v16  ;;  %v3856_v49 = vrot.slane %v3842_v43, %v5015_v16  ;;  %v3865_v51 = vrot.slane %v3857_v20, %v5015_v16  ;;  %v3872_v53 = vrot.slane %v3858_v44, %v5015_v16  ;;  %v4166_v42 = vld [vmem:[%s5512_s12 + $0x28] sm:$0xff]  ;;  %v4165_v43 = vld [vmem:[%s5512_s12 + $0x20] sm:$0xff]  ;;  %v4164_v20 = vld [vmem:[%s5512_s12 + $0x18] sm:$0xff] }
 0x7ba   : > { %v3877_v54 = vcombine.low %v3849_v48, %v3856_v49  ;;  %v4431_v55 = vcombine.high %v3849_v48, %v3856_v49  ;;  %v3893_v56 = vcombine.low %v3865_v51, %v3872_v53  ;;  %v4432_v57 = vcombine.high %v3865_v51, %v3872_v53  ;;  %v4435_v49 = vld [vmem:[%s5508_s8] ss:$0 sm:$0xff] }
 0x7bb   : > { %v4436_v53 = vld [vmem:[%s5509_s9] ss:$0 sm:$0xff] }
 0x7bc   : > { %v3884_v59 = vrot.slane %v3877_v54, %v5006_v10  ;;  %v3892_v60 = vrot.slane %v4431_v55, %v5006_v10  ;;  %v3900_v61 = vrot.slane %v3893_v56, %v5006_v10  ;;  %v3908_v62 = vrot.slane %v4432_v57, %v5006_v10  ;;  %v4163_v56 = vld [vmem:[%s5512_s12 + $0x10] sm:$0xff]  ;;  %v4162_v57 = vld [vmem:[%s5512_s12 + $0x8] sm:$0xff] }
 0x7be   : > { %v3910_v63 = vcombine.high %v3884_v59, %v3892_v60  ;;  %v3926_v1 = vcombine.high %v3900_v61, %v3908_v62  ;;  %v3909_v4 = vcombine.low %v3884_v59, %v3892_v60  ;;  %v3925_v5 = vcombine.low %v3900_v61, %v3908_v62  ;;  %v4437_v59 = vld [vmem:[%s5511_s11] ss:$0 sm:$0xff] }
 0x7c0   : > { %v3924_v7 = vrot.slane %v3910_v63, %v5015_v16  ;;  %v3940_v52 = vrot.slane %v3926_v1, %v5015_v16  ;;  %v3917_v8 = vrot.slane %v3909_v4, %v5015_v16  ;;  %v3933_v9 = vrot.slane %v3925_v5, %v5015_v16  ;;  %v4439_v1 = vld [vmem:[%s5513_s13] ss:$0 sm:$0xff] }
 0x7c2   : > { %v3943_v11 = vcombine.low %v3924_v7, %v3940_v52  ;;  %v3942_v2 = vcombine.high %v3917_v8, %v3933_v9  ;;  %v3941_v13 = vcombine.low %v3917_v8, %v3933_v9  ;;  %v3944_v10 = vcombine.high %v3924_v7, %v3940_v52 }
 0x7c4   : > { %3950 = vrot.lane.b32.xlu0 %v3943_v11, %s5549_s29  ;;  %3946 = vrot.lane.b32.xlu1 %v3942_v2, %s5550_s30  ;;  %s560_s29 = scalar_lea.vmem [#allocation2], %s4400_s21 }
 0x7c5   : > { %s4300_s30 = sshll.u32 %s560_s29, 4  ;;  %s4301_s30 = int_to_ptr.vmem [resolvable:$true] %s4300_s30 }
 0x7c6   : > { %s4728_s18 = scalar_lea.vmem %s4301_s30, 128  ;;  %p4735_p1 = scmp.lt.s32.totalorder %s4301_s30, %s4733_s27 }
 0x7c7   : > { %p4729_p12 = scmp.ne.s32.totalorder %s4301_s30, %s4728_s18  ;;  %p4736_p2 = scmp.lt.s32.totalorder %s4734_s24, %s4728_s18 }
 0x7c8   : > { %3954 = vrot.lane.b32.xlu1 %v3944_v10, %s5551_s25 }
 0x7c9   : > { %p4730_p13 = pnand %p4729_p12, %p4950_p4  ;;  %p4737_p3 = por %p4736_p2, %p4735_p1 }
 0x7cb   : > { %p4731_p0 = pneg %p4730_p13 }
 0x7cd   : > { %p4738_p5 = pnand %p4737_p3, %p4731_p0 }
 0x836   : > { %v3947_v45 = vpop.permute.xlu1 %3946  ;;  %v3951_v17 = vpop.permute.xlu0 %3950 }
 0x837   : > { %v3957_v14 = vsel %vm908_vm1, %v3941_v13, %v3947_v45 }
 0x838   : > { %v3958_v19 = vsel %vm912_vm4, %v3957_v14, %v3951_v17 }
 0x83a   : > { %v3955_v18 = vpop.permute.xlu1 %3954 }
 0x83b   : > { %v3959_v16 = vsel %vm916_vm6, %v3958_v19, %v3955_v18  ;;  %v4440_v18 = vld [vmem:[%s5514_s14] ss:$0 sm:$0xff] }
 0x83c   : > { %4586 = vmatmul.mubr.msk.f32.vlgmr.msra.gmra.mxu0 %vm3971_vm9, %v3959_v16  ;;  %v4441_v16 = vld [vmem:[%s5515_s15] ss:$0 sm:$0xff] }
 0x83d   : > { %4631 = vmatprep.mubr.msk.f32.mxu0 %vm4810_vm0, %v4806_v0  ;;  %4600 = vmatpush3.msra.mxu0 %v4176_v31 }
 0x83e   : > { %4601 = vmatprep.subr.mxu0 %v4806_v0 }
 0x83f   : > { %4602 = vmatpush3.msra.mxu0 %v4175_v33 }
 0x840   : > { %4603 = vmatprep.subr.mxu0 %v4806_v0 }
 0x841   : > { %4604 = vmatpush3.msra.mxu0 %v4174_v34 }
 0x842   : > { %4605 = vmatprep.subr.mxu0 %v4806_v0 }
 0x843   : > { %4606 = vmatpush3.msra.mxu0 %v4173_v35 }
 0x844   : > { %4607 = vmatprep.subr.mxu0 %v4806_v0 }
 0x845   : > { %4608 = vmatpush3.msra.mxu0 %v4172_v36 }
 0x846   : > { %4609 = vmatprep.subr.mxu0 %v4806_v0 }
 0x847   : > { %4610 = vmatpush3.msra.mxu0 %v4171_v37 }
 0x848   : > { %4611 = vmatprep.subr.mxu0 %v4806_v0 }
 0x849   : > { %4612 = vmatpush3.msra.mxu0 %v4170_v38 }
 0x84a   : > { %4613 = vmatprep.subr.mxu0 %v4806_v0 }
 0x84b   : > { %4614 = vmatpush3.msra.mxu0 %v4169_v39 }
 0x84c   : > { %4615 = vmatprep.subr.mxu0 %v4806_v0 }
 0x84d   : > { %4616 = vmatpush3.msra.mxu0 %v4168_v40 }
 0x84e   : > { %4617 = vmatprep.subr.mxu0 %v4806_v0 }
 0x84f   : > { %4618 = vmatpush3.msra.mxu0 %v4167_v41 }
 0x850   : > { %4619 = vmatprep.subr.mxu0 %v4806_v0 }
 0x851   : > { %4620 = vmatpush3.msra.mxu0 %v4166_v42 }
 0x852   : > { %4621 = vmatprep.subr.mxu0 %v4806_v0 }
 0x853   : > { %4622 = vmatpush3.msra.mxu0 %v4165_v43 }
 0x854   : > { %4623 = vmatprep.subr.mxu0 %v4806_v0 }
 0x855   : > { %4624 = vmatpush3.msra.mxu0 %v4164_v20 }
 0x856   : > { %4625 = vmatprep.subr.mxu0 %v4806_v0 }
 0x857   : > { %4626 = vmatpush3.msra.mxu0 %v4163_v56 }
 0x858   : > { %4627 = vmatprep.subr.mxu0 %v4806_v0 }
 0x859   : > { %4628 = vmatpush3.msra.mxu0 %v4162_v57 }
 0x85a   : > { %4629 = vmatprep.subr.mxu0 %v4806_v0 }
 0x85b   : > { %4630 = vmatpush3.msra.mxu0 %v4161_v58 }
 0x8fc   : > { %v4041_v21 = vpop.f32.mrf.mxu0 }
 0x8fd   : > { %v4042_v15 = vadd.f32 %v4433_v32, %v4041_v21 }
 0x8fe   : > { %v4587_v22 = vpop.f32.mrf.mxu0 }
 0x8ff   : > { %v4045_v24 = vadd.f32 %v4727_v23, %v4042_v15 }
 0x901   : > { %v4048_v6 = vsel %vm3971_vm9, %v4045_v24, 0.0 }
 0x902   : > { %4049 = vadd.xlane.f32.xlu1 %v4048_v6 }
 0x98b   : > { %v4050_v12 = vpop.xlane.xlu1 %4049 }
 0x98c   : > { %v4052_v50 = vmul.f32 0.03125, %v4050_v12 }
 0x98e   : > { %v4053_v25 = vsub.f32 %v4045_v24, %v4052_v50 }
 0x990   : > { %v4054_v26 = vmul.f32 %v4053_v25, %v4053_v25 }
 0x992   : > { %v4055_v3 = vsel %vm3971_vm9, %v4054_v26, 0.0 }
 0x993   : > { %4056 = vadd.xlane.f32.xlu0 %v4055_v3 }
 0xa1c   : > { %v4057_v44 = vpop.xlane.xlu0 %4056 }
 0xa1d   : > { %v4058_v46 = vmul.f32 0.03125, %v4057_v44 }
 0xa1f   : > { %v4059_v47 = vadd.f32 1e-05, %v4058_v46 }
 0xa21   : > { %4723 = vrsqrt.f32 %v4059_v47 }
 0xa2e   : > { %v4724_v48 = vpop.eup %4723 }
 0xa2f   : > { %v4061_v51 = vmul.f32 %v4724_v48, %v4053_v25 }
 0xa31   : > { %v4068_v54 = vmul.f32 %v4435_v49, %v4061_v51 }
 0xa33   : > { %v4075_v55 = vadd.f32 %v4436_v53, %v4068_v54 }
 0xa35   : > { %4597 = vmatmul.mubr.msk.f32.vlgmr.msra.gmra.mxu1 %vm3971_vm9, %v4075_v55 }
 0xaf5   : > { %v4156_v60 = vpop.f32.mrf.mxu1 }
 0xaf6   : > { %v4157_v61 = vadd.f32 %v4437_v59, %v4156_v60 }
 0xaf7   : > { %v4598_v62 = vpop.f32.mrf.mxu1 }
 0xaf8   : > { %v4160_v63 = vmax.f32 %v4157_v61, 0.0 }
 0xafa   : > { %4632 = vmatmul.mubr.f32.vlgmr.msra.gmra.mxu0 %v4160_v63 }
 0xbba   : > { %v4250_v4 = vpop.f32.mrf.mxu0 }
 0xbbb   : > { %v4251_v5 = vadd.f32 %v4439_v1, %v4250_v4 }
 0xbbc   : > { %v4633_v7 = vpop.f32.mrf.mxu0 }
 0xbbd   : > { %v4254_v52 = vadd.f32 %v4251_v5, %v4075_v55 }
 0xbbf   : > { %v4257_v0 = vsel %vm3971_vm9, %v4254_v52, 0.0 }
 0xbc0   : > { %4258 = vadd.xlane.f32.xlu1 %v4257_v0 }
 0xc49   : > { %v4259_v8 = vpop.xlane.xlu1 %4258 }
 0xc4a   : > { %v4260_v9 = vmul.f32 0.03125, %v4259_v8 }
 0xc4c   : > { %v4261_v11 = vsub.f32 %v4254_v52, %v4260_v9 }
 0xc4e   : > { %v4262_v2 = vmul.f32 %v4261_v11, %v4261_v11 }
 0xc50   : > { %v4263_v13 = vsel %vm3971_vm9, %v4262_v2, 0.0 }
 0xc51   : > { %4264 = vadd.xlane.f32.xlu0 %v4263_v13 }
 0xcda   : > { %v4265_v10 = vpop.xlane.xlu0 %4264 }
 0xcdb   : > { %v4266_v45 = vmul.f32 0.03125, %v4265_v10 }
 0xcdd   : > { %v4267_v17 = vadd.f32 1e-05, %v4266_v45 }
 0xcdf   : > { %4725 = vrsqrt.f32 %v4267_v17 }
 0xcec   : > { %v4726_v14 = vpop.eup %4725 }
 0xced   : > { %v4269_v19 = vmul.f32 %v4726_v14, %v4261_v11 }
 0xcef   : > { %v4276_v32 = vmul.f32 %v4440_v18, %v4269_v19 }
 0xcf1   : > { %v4283_v21 = vadd.f32 %v4441_v16, %v4276_v32 }
 0xcf3   : > { %4284 = vst.msk [vmem:[%s560_s29] sm:$0xff] %vm3971_vm9, %v4283_v21 }
 0xcf4   : > { %4741 = shalt.err (!%p4738_p5)
}
 0xcf5   : > { %s4742_s2 = scalar_lea.hbm %s4298_s3, 128  ;;  %s4746_s20 = scalar_lea.hbm %s5516_s16, 256 }
 0xcf6   : > { %p4743_p6 = scmp.ne.s32.totalorder %s4298_s3, %s4742_s2  ;;  %p4747_p10 = scmp.lt.s32.totalorder %s4298_s3, %s5516_s16 }
 0xcf7   : > { %p4748_p11 = scmp.lt.s32.totalorder %s4746_s20, %s4742_s2 }
 0xcf8   : > { %p4744_p7 = pnand %p4743_p6, %p4950_p4 }
 0xcf9   : > { %p4749_p12 = por %p4748_p11, %p4747_p10 }
 0xcfa   : > { %p4745_p9 = pneg %p4744_p7 }
 0xcfc   : > { %p4750_p13 = pnand %p4749_p12, %p4745_p9 }
 0xcfe   : > { %4753 = shalt.err (!%p4750_p13)
}
 0xcff   : > { %4634 = dma.vmem_to_hbm [thread:$0]  (%p4950_p4), %s4301_s30, 128, %s4298_s3, %s4286_s4  }
 0xd00 PF: > { %s5552_s25 = sld [smem:[#allocation5_spill]]  ;;  %p4640_p0 = scmp.ge.s32.totalorder %s4804_s26, 2 }
 0xd02   : > { %p4637_p1 = pnand %p4640_p0, %p4957_p8 }
 0xd04   : > { %p4638_p2 = pneg %p4637_p1 }
 0xd06   : > { %s4312_s1 = sand.u32 1, %s5552_s25  }
 0xd07   : > { %s4313_s27 = scalar_lea.sflag [#allocation3], %s4312_s1 }
 0xd08   : > { %4779 = dma.done.wait (%p4638_p2), %s4313_s27, 128  }
 0xd09   : > { %4781 = vsyncadd (%p4638_p2), %s4313_s27, 4294967168  ;;  %s29_s26 = sadd.s32 1, %s4804_s26   ;;  %s5554_s24 = sld [smem:[#allocation6_spill]] }
 0xd0a   : > { %p26_p3 = scmp.ge.s32.totalorder %s29_s26, 4   ;;  %s5555_s25 = sld [smem:[#allocation7_spill]] }
 0xd0b   : > { %s5556_s21 = smov %s4788_s22  ;;  %s5557_s22 = smov %s4792_s23 }
 0xd0c   : > { %s5558_s23 = smov %s4963_s19  ;;  %28 = sbr.rel (!%p26_p3) target bundleno = 10 (0xa), region = 125 }
 0xd11   :  { %4318 = vsyncpa [#allocation3], 1 }
 0xd12   :  { %4320 = vsyncpa [#allocation3 + $0x1], 1 }

</bundles_post_ra>
